<compile_context>
chip_gen: v6e
topology: v6e:2x2x1
jax: 0.10.0
libtpu: 0.0.40
codegen_flags: <defaults>
</compile_context>

<pallas_src>
import functools

import jax
import jax.numpy as jnp
from jax.experimental import pallas as pl
from jax.experimental.pallas import tpu as pltpu


def _basic_conv_kernel(x_ref, w_ref, scale_ref, shift_ref, o_ref, *,
                       kh_size, kw_size, stride, dilation, relu):
    # x_ref:     (1, H_pad, W_pad, C_in)  zero-padded NHWC batch slice
    # w_ref:     (KH*KW, C_in, C_out)
    # scale_ref: (1, C_out)   folded BN scale  (gamma / sqrt(var + eps))
    # shift_ref: (1, C_out)   folded BN shift  (beta - mean * scale [+ bias*scale])
    # o_ref:     (1, H_out, W_out, C_out)
    _, h_out, w_out, c_out = o_ref.shape
    c_in = x_ref.shape[-1]

    x = x_ref[0]                                        # (H_pad, W_pad, C_in)
    acc = jnp.zeros((h_out * w_out, c_out), jnp.float32)

    # One MXU matmul per kernel tap, statically unrolled (KH*KW is small).
    for kh in range(kh_size):
        for kw in range(kw_size):
            h0 = kh * dilation
            w0 = kw * dilation
            patch = jax.lax.slice(
                x,
                (h0, w0, 0),
                (h0 + (h_out - 1) * stride + 1,
                 w0 + (w_out - 1) * stride + 1,
                 c_in),
                (stride, stride, 1))                    # (H_out, W_out, C_in)
            lhs = patch.reshape(h_out * w_out, c_in)
            acc = acc + jnp.dot(lhs, w_ref[kh * kw_size + kw],
                                preferred_element_type=jnp.float32)

    # Fused BatchNorm (per-output-channel affine) + ReLU, then a single store.
    y = acc * scale_ref[...] + shift_ref[...]
    if relu:
        y = jnp.maximum(y, 0.0)
    o_ref[...] = y.reshape(1, h_out, w_out, c_out).astype(o_ref.dtype)


def basic_conv(x_nchw, weight_oihw, *, stride=1, padding=0, dilation=1,
               groups=1, bias=None, bn_params=None, relu=True, eps=1e-5):
    """Fused Conv2d + (eval-mode) BatchNorm2d + ReLU matching BasicConv.forward.

    x_nchw:      (B, C_in, H, W) float32
    weight_oihw: (C_out, C_in, KH, KW) float32  (PyTorch Conv2d layout)
    bn_params:   None, or (gamma, beta, running_mean, running_var), each (C_out,)
    """
    if groups != 1:
        # TODO(synk): grouped convolution (groups > 1) not implemented.
        raise NotImplementedError("groups > 1 not supported")

    B, C_in, H, W = x_nchw.shape
    C_out, c_in_w, KH, KW = weight_oihw.shape
    assert c_in_w == C_in

    H_out = (H + 2 * padding - dilation * (KH - 1) - 1) // stride + 1
    W_out = (W + 2 * padding - dilation * (KW - 1) - 1) // stride + 1
    H_pad = H + 2 * padding
    W_pad = W + 2 * padding

    # Channels-last activations, zero-padded spatially outside the kernel.
    x_nhwc = jnp.transpose(x_nchw, (0, 2, 3, 1)).astype(jnp.float32)
    x_pad = jnp.pad(x_nhwc, ((0, 0), (padding, padding),
                             (padding, padding), (0, 0)))

    # (C_out, C_in, KH, KW) -> (KH*KW, C_in, C_out) so each tap is a 2-D matmul RHS.
    w = jnp.transpose(weight_oihw, (2, 3, 1, 0)).reshape(KH * KW, C_in, C_out)
    w = w.astype(jnp.float32)

    # Fold eval-mode BatchNorm (and optional conv bias) into scale/shift.
    # TODO(synk): training-mode BatchNorm (batch statistics + running-stat
    # update) has no clean single-pass equivalent here; eval-mode running
    # statistics are used, matching module.eval() inference.
    if bn_params is not None:
        gamma, beta, mean, var = bn_params
        scale = gamma / jnp.sqrt(var + eps)
        shift = beta - mean * scale
    else:
        scale = jnp.ones((C_out,), jnp.float32)
        shift = jnp.zeros((C_out,), jnp.float32)
    if bias is not None:
        shift = shift + bias * scale
    scale = scale.reshape(1, C_out).astype(jnp.float32)
    shift = shift.reshape(1, C_out).astype(jnp.float32)

    kernel = functools.partial(
        _basic_conv_kernel, kh_size=KH, kw_size=KW,
        stride=stride, dilation=dilation, relu=relu)

    out_nhwc = pl.pallas_call(
        kernel,
        out_shape=jax.ShapeDtypeStruct((B, H_out, W_out, C_out), jnp.float32),
        grid=(B,),
        in_specs=[
            # Per-batch activation tile (double-buffered by the pipeline).
            pl.BlockSpec((1, H_pad, W_pad, C_in), lambda b: (b, 0, 0, 0)),
            # Weights / folded BN params: same block every step (stay resident).
            pl.BlockSpec((KH * KW, C_in, C_out), lambda b: (0, 0, 0)),
            pl.BlockSpec((1, C_out), lambda b: (0, 0)),
            pl.BlockSpec((1, C_out), lambda b: (0, 0)),
        ],
        out_specs=pl.BlockSpec((1, H_out, W_out, C_out), lambda b: (b, 0, 0, 0)),
        compiler_params=pltpu.CompilerParams(
            # Batch axis is independent -> megacore sharding on v7x, no-op on
            # single-TC v5e/v6e.
            dimension_semantics=("parallel",),
            # Explicit, generation-safe scoped-VMEM budget (<= physical on
            # v5e/v6e/v7x); per-batch tiles here are far below it.
            vmem_limit_bytes=32 * 1024 * 1024,
        ),
    )(x_pad, w, scale, shift)

    # TODO(synk): for very large H*W a second grid axis over output rows (with
    # overlapping input windows) would be needed to keep tiles within VMEM.
    return jnp.transpose(out_nhwc, (0, 3, 1, 2))


def reference_basic_conv(x, w, bn_params, *, stride, padding, dilation,
                         relu, eps=1e-5, bias=None):
    """Pure-JAX/XLA reference mirroring BasicConv.forward (eval-mode BN)."""
    y = jax.lax.conv_general_dilated(
        x, w,
        window_strides=(stride, stride),
        padding=[(padding, padding), (padding, padding)],
        rhs_dilation=(dilation, dilation),
        dimension_numbers=("NCHW", "OIHW", "NCHW"))
    if bias is not None:
        y = y + bias[None, :, None, None]
    if bn_params is not None:
        gamma, beta, mean, var = bn_params
        scale = gamma / jnp.sqrt(var + eps)
        shift = beta - mean * scale
        y = y * scale[None, :, None, None] + shift[None, :, None, None]
    if relu:
        y = jnp.maximum(y, 0.0)
    return y


if __name__ == "__main__":
    # Small shapes consistent with BasicConv usage: conv3x3, stride 1, pad 1,
    # bn=True, relu=True, bias=False.
    B, C_in, H, W = 2, 4, 16, 16
    C_out, K = 8, 3
    stride, padding, dilation = 1, 1, 1

    key = jax.random.PRNGKey(0)
    kx, kw, kg, kb, km, kv = jax.random.split(key, 6)

    x = jax.random.normal(kx, (B, C_in, H, W), dtype=jnp.float32)
    weight = jax.random.normal(kw, (C_out, C_in, K, K), dtype=jnp.float32) * 0.1

    # Deterministic synthetic eval-mode BatchNorm parameters.
    gamma = 1.0 + 0.1 * jax.random.normal(kg, (C_out,), dtype=jnp.float32)
    beta = 0.1 * jax.random.normal(kb, (C_out,), dtype=jnp.float32)
    running_mean = 0.1 * jax.random.normal(km, (C_out,), dtype=jnp.float32)
    running_var = jax.random.uniform(kv, (C_out,), dtype=jnp.float32,
                                     minval=0.5, maxval=1.5)
    bn_params = (gamma, beta, running_mean, running_var)

    out = basic_conv(x, weight, stride=stride, padding=padding,
                     dilation=dilation, bias=None, bn_params=bn_params,
                     relu=True)
    out = jax.block_until_ready(out)

    ref = reference_basic_conv(x, weight, bn_params, stride=stride,
                               padding=padding, dilation=dilation, relu=True)

    assert out.shape == (B, C_out, H, W)
    assert jnp.allclose(out, ref, atol=1e-4, rtol=1e-4), "mismatch vs reference"

    print("KERNEL_OK")
</pallas_src>

<mosaic_0001>
module attributes {stable_mosaic.version = 11 : i64} {
  func.func @_basic_conv_kernel(%arg0: i32, %arg1: memref<1x18x18x4xf32, #tpu.memory_space<vmem>>, %arg2: memref<9x4x8xf32, #tpu.memory_space<vmem>>, %arg3: memref<1x8xf32, #tpu.memory_space<vmem>>, %arg4: memref<1x8xf32, #tpu.memory_space<vmem>>, %arg5: memref<1x16x16x8xf32, #tpu.memory_space<vmem>>) attributes {dimension_semantics = [#tpu.dimension_semantics<parallel>], iteration_bounds = array<i64: 2>, scalar_prefetch = 0 : i64, scratch_operands = 0 : i64, tpu.core_type = #tpu.core_type<tc>, window_params = [{transform_indices = @transform_0, window_bounds = array<i64: 1, 18, 18, 4>}, {pipeline_mode = #tpu.pipeline_mode<synchronous>, transform_indices = @transform_1, window_bounds = array<i64: 9, 4, 8>}, {pipeline_mode = #tpu.pipeline_mode<synchronous>, transform_indices = @transform_2, window_bounds = array<i64: 1, 8>}, {pipeline_mode = #tpu.pipeline_mode<synchronous>, transform_indices = @transform_3, window_bounds = array<i64: 1, 8>}, {transform_indices = @transform_4, window_bounds = array<i64: 1, 16, 16, 8>}]} {
    %c0 = arith.constant 0 : index
    %c0_0 = arith.constant 0 : index
    %c0_1 = arith.constant 0 : index
    %c0_2 = arith.constant 0 : index
    %0 = vector.load %arg1[%c0, %c0_0, %c0_1, %c0_2] : memref<1x18x18x4xf32, #tpu.memory_space<vmem>>, vector<1x18x18x4xf32>
    %1 = vector.shape_cast %0 : vector<1x18x18x4xf32> to vector<18x18x4xf32>
    %cst = arith.constant 0.000000e+00 : f32
    %2 = vector.broadcast %cst : f32 to vector<256x8xf32>
    %3 = vector.extract_strided_slice %1 {offsets = [0, 0, 0], sizes = [16, 16, 4], strides = [1, 1, 1]} : vector<18x18x4xf32> to vector<16x16x4xf32>
    %4 = vector.shape_cast %3 : vector<16x16x4xf32> to vector<256x4xf32>
    %c0_3 = arith.constant 0 : index
    %c0_4 = arith.constant 0 : index
    %c0_5 = arith.constant 0 : index
    %5 = vector.load %arg2[%c0_3, %c0_4, %c0_5] : memref<9x4x8xf32, #tpu.memory_space<vmem>>, vector<1x4x8xf32>
    %6 = vector.shape_cast %5 : vector<1x4x8xf32> to vector<4x8xf32>
    %cst_6 = arith.constant dense<0.000000e+00> : vector<256x8xf32>
    %7 = tpu.matmul %4, %6, %cst_6 {dimension_numbers = #tpu.dot_dimension_numbers<[1], [0], [0], [1], [0, 0, 1, 1], [], []>} : vector<256x4xf32>, vector<4x8xf32>, vector<256x8xf32> -> vector<256x8xf32>
    %8 = arith.addf %2, %7 : vector<256x8xf32>
    %9 = vector.extract_strided_slice %1 {offsets = [0, 1, 0], sizes = [16, 16, 4], strides = [1, 1, 1]} : vector<18x18x4xf32> to vector<16x16x4xf32>
    %10 = vector.shape_cast %9 : vector<16x16x4xf32> to vector<256x4xf32>
    %c1 = arith.constant 1 : index
    %c0_7 = arith.constant 0 : index
    %c0_8 = arith.constant 0 : index
    %11 = vector.load %arg2[%c1, %c0_7, %c0_8] : memref<9x4x8xf32, #tpu.memory_space<vmem>>, vector<1x4x8xf32>
    %12 = vector.shape_cast %11 : vector<1x4x8xf32> to vector<4x8xf32>
    %cst_9 = arith.constant dense<0.000000e+00> : vector<256x8xf32>
    %13 = tpu.matmul %10, %12, %cst_9 {dimension_numbers = #tpu.dot_dimension_numbers<[1], [0], [0], [1], [0, 0, 1, 1], [], []>} : vector<256x4xf32>, vector<4x8xf32>, vector<256x8xf32> -> vector<256x8xf32>
    %14 = arith.addf %8, %13 : vector<256x8xf32>
    %15 = vector.extract_strided_slice %1 {offsets = [0, 2, 0], sizes = [16, 16, 4], strides = [1, 1, 1]} : vector<18x18x4xf32> to vector<16x16x4xf32>
    %16 = vector.shape_cast %15 : vector<16x16x4xf32> to vector<256x4xf32>
    %c2 = arith.constant 2 : index
    %c0_10 = arith.constant 0 : index
    %c0_11 = arith.constant 0 : index
    %17 = vector.load %arg2[%c2, %c0_10, %c0_11] : memref<9x4x8xf32, #tpu.memory_space<vmem>>, vector<1x4x8xf32>
    %18 = vector.shape_cast %17 : vector<1x4x8xf32> to vector<4x8xf32>
    %cst_12 = arith.constant dense<0.000000e+00> : vector<256x8xf32>
    %19 = tpu.matmul %16, %18, %cst_12 {dimension_numbers = #tpu.dot_dimension_numbers<[1], [0], [0], [1], [0, 0, 1, 1], [], []>} : vector<256x4xf32>, vector<4x8xf32>, vector<256x8xf32> -> vector<256x8xf32>
    %20 = arith.addf %14, %19 : vector<256x8xf32>
    %21 = vector.extract_strided_slice %1 {offsets = [1, 0, 0], sizes = [16, 16, 4], strides = [1, 1, 1]} : vector<18x18x4xf32> to vector<16x16x4xf32>
    %22 = vector.shape_cast %21 : vector<16x16x4xf32> to vector<256x4xf32>
    %c3 = arith.constant 3 : index
    %c0_13 = arith.constant 0 : index
    %c0_14 = arith.constant 0 : index
    %23 = vector.load %arg2[%c3, %c0_13, %c0_14] : memref<9x4x8xf32, #tpu.memory_space<vmem>>, vector<1x4x8xf32>
    %24 = vector.shape_cast %23 : vector<1x4x8xf32> to vector<4x8xf32>
    %cst_15 = arith.constant dense<0.000000e+00> : vector<256x8xf32>
    %25 = tpu.matmul %22, %24, %cst_15 {dimension_numbers = #tpu.dot_dimension_numbers<[1], [0], [0], [1], [0, 0, 1, 1], [], []>} : vector<256x4xf32>, vector<4x8xf32>, vector<256x8xf32> -> vector<256x8xf32>
    %26 = arith.addf %20, %25 : vector<256x8xf32>
    %27 = vector.extract_strided_slice %1 {offsets = [1, 1, 0], sizes = [16, 16, 4], strides = [1, 1, 1]} : vector<18x18x4xf32> to vector<16x16x4xf32>
    %28 = vector.shape_cast %27 : vector<16x16x4xf32> to vector<256x4xf32>
    %c4 = arith.constant 4 : index
    %c0_16 = arith.constant 0 : index
    %c0_17 = arith.constant 0 : index
    %29 = vector.load %arg2[%c4, %c0_16, %c0_17] : memref<9x4x8xf32, #tpu.memory_space<vmem>>, vector<1x4x8xf32>
    %30 = vector.shape_cast %29 : vector<1x4x8xf32> to vector<4x8xf32>
    %cst_18 = arith.constant dense<0.000000e+00> : vector<256x8xf32>
    %31 = tpu.matmul %28, %30, %cst_18 {dimension_numbers = #tpu.dot_dimension_numbers<[1], [0], [0], [1], [0, 0, 1, 1], [], []>} : vector<256x4xf32>, vector<4x8xf32>, vector<256x8xf32> -> vector<256x8xf32>
    %32 = arith.addf %26, %31 : vector<256x8xf32>
    %33 = vector.extract_strided_slice %1 {offsets = [1, 2, 0], sizes = [16, 16, 4], strides = [1, 1, 1]} : vector<18x18x4xf32> to vector<16x16x4xf32>
    %34 = vector.shape_cast %33 : vector<16x16x4xf32> to vector<256x4xf32>
    %c5 = arith.constant 5 : index
    %c0_19 = arith.constant 0 : index
    %c0_20 = arith.constant 0 : index
    %35 = vector.load %arg2[%c5, %c0_19, %c0_20] : memref<9x4x8xf32, #tpu.memory_space<vmem>>, vector<1x4x8xf32>
    %36 = vector.shape_cast %35 : vector<1x4x8xf32> to vector<4x8xf32>
    %cst_21 = arith.constant dense<0.000000e+00> : vector<256x8xf32>
    %37 = tpu.matmul %34, %36, %cst_21 {dimension_numbers = #tpu.dot_dimension_numbers<[1], [0], [0], [1], [0, 0, 1, 1], [], []>} : vector<256x4xf32>, vector<4x8xf32>, vector<256x8xf32> -> vector<256x8xf32>
    %38 = arith.addf %32, %37 : vector<256x8xf32>
    %39 = vector.extract_strided_slice %1 {offsets = [2, 0, 0], sizes = [16, 16, 4], strides = [1, 1, 1]} : vector<18x18x4xf32> to vector<16x16x4xf32>
    %40 = vector.shape_cast %39 : vector<16x16x4xf32> to vector<256x4xf32>
    %c6 = arith.constant 6 : index
    %c0_22 = arith.constant 0 : index
    %c0_23 = arith.constant 0 : index
    %41 = vector.load %arg2[%c6, %c0_22, %c0_23] : memref<9x4x8xf32, #tpu.memory_space<vmem>>, vector<1x4x8xf32>
    %42 = vector.shape_cast %41 : vector<1x4x8xf32> to vector<4x8xf32>
    %cst_24 = arith.constant dense<0.000000e+00> : vector<256x8xf32>
    %43 = tpu.matmul %40, %42, %cst_24 {dimension_numbers = #tpu.dot_dimension_numbers<[1], [0], [0], [1], [0, 0, 1, 1], [], []>} : vector<256x4xf32>, vector<4x8xf32>, vector<256x8xf32> -> vector<256x8xf32>
    %44 = arith.addf %38, %43 : vector<256x8xf32>
    %45 = vector.extract_strided_slice %1 {offsets = [2, 1, 0], sizes = [16, 16, 4], strides = [1, 1, 1]} : vector<18x18x4xf32> to vector<16x16x4xf32>
    %46 = vector.shape_cast %45 : vector<16x16x4xf32> to vector<256x4xf32>
    %c7 = arith.constant 7 : index
    %c0_25 = arith.constant 0 : index
    %c0_26 = arith.constant 0 : index
    %47 = vector.load %arg2[%c7, %c0_25, %c0_26] : memref<9x4x8xf32, #tpu.memory_space<vmem>>, vector<1x4x8xf32>
    %48 = vector.shape_cast %47 : vector<1x4x8xf32> to vector<4x8xf32>
    %cst_27 = arith.constant dense<0.000000e+00> : vector<256x8xf32>
    %49 = tpu.matmul %46, %48, %cst_27 {dimension_numbers = #tpu.dot_dimension_numbers<[1], [0], [0], [1], [0, 0, 1, 1], [], []>} : vector<256x4xf32>, vector<4x8xf32>, vector<256x8xf32> -> vector<256x8xf32>
    %50 = arith.addf %44, %49 : vector<256x8xf32>
    %51 = vector.extract_strided_slice %1 {offsets = [2, 2, 0], sizes = [16, 16, 4], strides = [1, 1, 1]} : vector<18x18x4xf32> to vector<16x16x4xf32>
    %52 = vector.shape_cast %51 : vector<16x16x4xf32> to vector<256x4xf32>
    %c8 = arith.constant 8 : index
    %c0_28 = arith.constant 0 : index
    %c0_29 = arith.constant 0 : index
    %53 = vector.load %arg2[%c8, %c0_28, %c0_29] : memref<9x4x8xf32, #tpu.memory_space<vmem>>, vector<1x4x8xf32>
    %54 = vector.shape_cast %53 : vector<1x4x8xf32> to vector<4x8xf32>
    %cst_30 = arith.constant dense<0.000000e+00> : vector<256x8xf32>
    %55 = tpu.matmul %52, %54, %cst_30 {dimension_numbers = #tpu.dot_dimension_numbers<[1], [0], [0], [1], [0, 0, 1, 1], [], []>} : vector<256x4xf32>, vector<4x8xf32>, vector<256x8xf32> -> vector<256x8xf32>
    %56 = arith.addf %50, %55 : vector<256x8xf32>
    %c0_31 = arith.constant 0 : index
    %c0_32 = arith.constant 0 : index
    %57 = vector.load %arg3[%c0_31, %c0_32] : memref<1x8xf32, #tpu.memory_space<vmem>>, vector<1x8xf32>
    %58 = vector.broadcast %57 : vector<1x8xf32> to vector<256x8xf32>
    %59 = arith.mulf %56, %58 : vector<256x8xf32>
    %c0_33 = arith.constant 0 : index
    %c0_34 = arith.constant 0 : index
    %60 = vector.load %arg4[%c0_33, %c0_34] : memref<1x8xf32, #tpu.memory_space<vmem>>, vector<1x8xf32>
    %61 = vector.broadcast %60 : vector<1x8xf32> to vector<256x8xf32>
    %62 = arith.addf %59, %61 : vector<256x8xf32>
    %cst_35 = arith.constant 0.000000e+00 : f32
    %63 = vector.broadcast %cst_35 : f32 to vector<256x8xf32>
    %64 = arith.maximumf %62, %63 : vector<256x8xf32>
    %65 = vector.shape_cast %64 : vector<256x8xf32> to vector<1x16x16x8xf32>
    %c0_36 = arith.constant 0 : index
    %c0_37 = arith.constant 0 : index
    %c0_38 = arith.constant 0 : index
    %c0_39 = arith.constant 0 : index
    %66 = vector.load %arg5[%c0_36, %c0_37, %c0_38, %c0_39] : memref<1x16x16x8xf32, #tpu.memory_space<vmem>>, vector<1x16x16x8xf32>
    tpu.vector_store %arg5[%c0_36, %c0_37, %c0_38, %c0_39], %65 {strides = array<i32>} : memref<1x16x16x8xf32, #tpu.memory_space<vmem>>, vector<1x16x16x8xf32>,
    return
  }
  func.func @transform_0(%arg0: i32) -> (i32, i32, i32, i32) {
    %c0_i32 = arith.constant 0 : i32
    %c0_i32_0 = arith.constant 0 : i32
    %c0_i32_1 = arith.constant 0 : i32
    %c0_i32_2 = arith.constant 0 : i32
    return %arg0, %c0_i32, %c0_i32_0, %c0_i32_1 : i32, i32, i32, i32
  }
  func.func @transform_1(%arg0: i32) -> (i32, i32, i32) {
    %c0_i32 = arith.constant 0 : i32
    %c0_i32_0 = arith.constant 0 : i32
    %c0_i32_1 = arith.constant 0 : i32
    %c0_i32_2 = arith.constant 0 : i32
    return %c0_i32, %c0_i32_0, %c0_i32_1 : i32, i32, i32
  }
  func.func @transform_2(%arg0: i32) -> (i32, i32) {
    %c0_i32 = arith.constant 0 : i32
    %c0_i32_0 = arith.constant 0 : i32
    %c0_i32_1 = arith.constant 0 : i32
    return %c0_i32, %c0_i32_0 : i32, i32
  }
  func.func @transform_3(%arg0: i32) -> (i32, i32) {
    %c0_i32 = arith.constant 0 : i32
    %c0_i32_0 = arith.constant 0 : i32
    %c0_i32_1 = arith.constant 0 : i32
    return %c0_i32, %c0_i32_0 : i32, i32
  }
  func.func @transform_4(%arg0: i32) -> (i32, i32, i32, i32) {
    %c0_i32 = arith.constant 0 : i32
    %c0_i32_0 = arith.constant 0 : i32
    %c0_i32_1 = arith.constant 0 : i32
    %c0_i32_2 = arith.constant 0 : i32
    return %arg0, %c0_i32, %c0_i32_0, %c0_i32_1 : i32, i32, i32, i32
  }
}

</mosaic_0001>

<bundles_post_ra>
// kernel: tpu_custom_call.1
= control target key start
LH: loop header
LB: loop body
LE: loop exit
PB: predicated region body
PF: predicated region fallthrough
CT: control target
= control target key end

     0   :  { %s4306_s15 = smov 0   ;;  %s6045_s0 = inlined_call_operand.vmem [shape: f32[2,18,18,4], index: 0, kind: input, shape index: {}]   ;;  %s6046_s1 = inlined_call_operand.vmem [shape: f32[9,4,8], index: 1, kind: input, shape index: {}]   ;;  %s6047_s2 = inlined_call_operand.vmem [shape: f32[1,8], index: 2, kind: input, shape index: {}]   ;;  %s6048_s3 = inlined_call_operand.vmem [shape: f32[1,8], index: 3, kind: input, shape index: {}]   ;;  %s6049_s4 = inlined_call_operand.vmem [shape: f32[2,16,16,8], index: 4, kind: output, shape index: {}]  }
   0x1 LB: > { %s3197_s16 = sadd.s32 4294967295, %s4279_s15   ;;  %p3201_p0 = scmp.ge.s32.totalorder %s4279_s15, 1  ;;  %s4279_s15 = sphi %s4306_s15, %s14_s15  }
   0x2   : > { %p162_p1 = scmp.lt.s32.totalorder %s4279_s15, 3 }
   0x4   : > { %p163_p2 = pnand %p3201_p0, %p162_p1 }
   0x6   : > { %166 = sbr.rel (%p163_p2) target bundleno = 513 (0x201), region = 36 }
   0xb   : > { %v3205_v0 = vld [vmem:[%s6046_s1 + $0x4] sm:$0xf]  ;;  %vm449_vm0 = vcmask 1043456   ;;  %p188_p3 = scmp.lt.s32.totalorder %s3197_s16, 1  ;;  %v252_v1 = vld [vmem:[%s6046_s1] sm:$0xf] }
   0xc   : > { %4262 = vmatprep.subr.msk.mxu1 %vm449_vm0, %v3205_v0  ;;  %3812 = vmatprep.subr.msk.mxu0 %vm449_vm0, %v3205_v0  ;;  %v3272_v2 = vld [vmem:[%s6046_s1 + $0x8] sm:$0xf]  ;;  %vm301_vm1 = vcmask 1046528   ;;  %vm384_vm2 = vcmask 31744   ;;  %v4378_v21 = vld [vmem:[%s6046_s1 + $0xc] sm:$0xf] }
   0xd   : > { %4263 = vmatpush3.msk.msra.mxu1 %vm449_vm0, %v3205_v0  ;;  %3813 = vmatpush3.msk.msra.mxu0 %vm449_vm0, %v3205_v0  ;;  %s6343_s16 = smov (!%p188_p3, %s3197_s16), 1  ;;  %v4396_v28 = vld [vmem:[%s6046_s1 + $0x10] sm:$0xf]  ;;  %vm970_vm3 = vcmask 1045504   ;;  %vm3109_vm4 = vcmask 64512  }
   0xe   : > { %3862 = vmatprep.subr.msk.mxu1 %vm449_vm0, %v252_v1  ;;  %3912 = vmatprep.subr.msk.mxu0 %vm449_vm0, %v3272_v2  ;;  %s4264_s23 = smul.u32 432, %s6343_s16  ;;  %s3514_s19 = sshll.u32 %s6343_s16, 8 }
   0xf   : > { %s5841_s21 = scalar_lea.vmem %s6049_s4, %s3514_s19 }
  0x10   : > { %s4335_s26 = scalar_lea.vmem %s6045_s0, %s4264_s23 }
  0x11   : > { %v4338_v3 = vld [vmem:[%s4335_s26] sm:$0xff]  ;;  %v4341_v4 = vld [vmem:[%s4335_s26 + $0x8] sm:$0xff]  ;;  %v4353_v10 = vld [vmem:[%s4335_s26 + $0x10] sm:$0x3] }
  0x12   : > { %v4344_v5 = vld [vmem:[%s4335_s26 + $0xc0] sm:$0xff]  ;;  %v302_v6 = vrot.slane %v4338_v3, 1  ;;  %v303_v7 = vrot.slane %v4341_v4, 1  ;;  %v4349_v8 = vld [vmem:[%s4335_s26 + $0xc8] sm:$0xff]  ;;  %v305_v12 = vrot.slane %v4353_v10, 1  ;;  %v4361_v14 = vld [vmem:[%s4335_s26 + $0x18] sm:$0xff] }
  0x13   : > { %v342_v9 = vrot.slane %v4344_v5, 1  ;;  %v343_v11 = vrot.slane %v4349_v8, 1  ;;  %v4358_v13 = vld [vmem:[%s4335_s26 + $0xd0] sm:$0x3]  ;;  %v4366_v17 = vld [vmem:[%s4335_s26 + $0x20] sm:$0xff]  ;;  %v307_v18 = vrot.slane %v4361_v14, 1 }
  0x14   : > { %v304_v15 = vsel %vm301_vm1, %v302_v6, %v303_v7  ;;  %v345_v16 = vrot.slane %v4358_v13, 1  ;;  %v4370_v19 = vld [vmem:[%s4335_s26 + $0xd8] sm:$0xff]  ;;  %v4373_v20 = vld [vmem:[%s4335_s26 + $0xe0] sm:$0xff]  ;;  %v306_v23 = vsel %vm301_vm1, %v303_v7, %v305_v12  ;;  %v308_v24 = vrot.slane %v4366_v17, 1  ;;  %v4388_v26 = vld [vmem:[%s4335_s26 + $0x28] sm:$0x3] }
  0x15   : > { %3814 = vmatprep.mubr.msk.f32.mxu0 %vm384_vm2, %v304_v15  ;;  %v4382_v22 = vsel %vm301_vm1, %v342_v9, %v343_v11  ;;  %v347_v25 = vrot.slane %v4370_v19, 1  ;;  %v4391_v27 = vld [vmem:[%s4335_s26 + $0xe8] sm:$0x3]  ;;  %v348_v30 = vrot.slane %v4373_v20, 1  ;;  %v310_v31 = vrot.slane %v4388_v26, 1  ;;  %v4408_v33 = vld [vmem:[%s4335_s26 + $0x30] sm:$0xff] }
  0x16   : > { %6132 = vst [vmem:[#allocation2_spill] sm:$0xff] %v4382_v22  ;;  %3838 = vmatprep.mubr.msk.f32.mxu1 %vm384_vm2, %v4382_v22  ;;  %3815 = vmatmul.mubr.msk.f32.vlgmr.msra.gmra.mxu0 %vm384_vm2, %v306_v23  ;;  %v4402_v29 = vsel %vm301_vm1, %v343_v11, %v345_v16  ;;  %v350_v32 = vrot.slane %v4391_v27, 1  ;;  %v4411_v34 = vld [vmem:[%s4335_s26 + $0x38] sm:$0xff]  ;;  %v4414_v35 = vld [vmem:[%s4335_s26 + $0xf0] sm:$0xff]  ;;  %v4420_v36 = vsel %vm301_vm1, %v307_v18, %v308_v24  ;;  %v312_v37 = vrot.slane %v4408_v33, 1  ;;  %v4448_v47 = vld [vmem:[%s4335_s26 + $0x48] sm:$0xff] }
  0x17   : > { %6133 = vst [vmem:[#allocation3_spill] sm:$0xff] %v4402_v29  ;;  %3839 = vmatmul.mubr.msk.f32.vlgmr.msra.gmra.mxu1 %vm384_vm2, %v4402_v29  ;;  %3913 = vmatpush3.msk.msra.mxu0 %vm449_vm0, %v3272_v2  ;;  %6134 = vst [vmem:[#allocation4_spill] sm:$0xff] %v4420_v36  ;;  %v313_v38 = vrot.slane %v4411_v34, 1  ;;  %v4425_v39 = vld [vmem:[%s4335_s26 + $0xf8] sm:$0xff]  ;;  %v352_v40 = vrot.slane %v4414_v35, 1  ;;  %v4435_v42 = vsel %vm301_vm1, %v347_v25, %v348_v30  ;;  %v4451_v48 = vld [vmem:[%s4335_s26 + $0x50] sm:$0xff] }
  0x18   : > { %v4429_v41 = vld [vmem:[%s4335_s26 + $0x40] sm:$0x3]  ;;  %3863 = vmatpush3.msk.msra.mxu1 %vm449_vm0, %v252_v1  ;;  %3817 = vmatprep.mubr.msk.f32.mxu0 %vm384_vm2, %v4420_v36  ;;  %6135 = vst [vmem:[#allocation5_spill] sm:$0xff] %v4435_v42  ;;  %v4438_v43 = vsel %vm301_vm1, %v308_v24, %v310_v31  ;;  %v4441_v44 = vsel %vm301_vm1, %v348_v30, %v350_v32  ;;  %v353_v45 = vrot.slane %v4425_v39, 1  ;;  %v317_v52 = vrot.slane %v4448_v47, 1  ;;  %v4462_v53 = vld [vmem:[%s4335_s26 + $0x108] sm:$0xff] }
  0x19   : > { %6136 = vst [vmem:[#allocation6_spill] sm:$0xff] %v4438_v43  ;;  %6137 = vst [vmem:[#allocation7_spill] sm:$0xff] %v4441_v44  ;;  %v4445_v46 = vld [vmem:[%s4335_s26 + $0x100] sm:$0x3]  ;;  %3841 = vmatprep.mubr.msk.f32.mxu1 %vm384_vm2, %v4435_v42  ;;  %v4456_v49 = vsel %vm301_vm1, %v312_v37, %v313_v38  ;;  %v315_v50 = vrot.slane %v4429_v41, 1  ;;  %v4465_v54 = vld [vmem:[%s4335_s26 + $0x110] sm:$0xff]  ;;  %3962 = vmatprep.subr.msk.mxu1 %vm449_vm0, %v4378_v21 }
  0x1a   : > { %6138 = vst [vmem:[#allocation8_spill] sm:$0xff] %v4456_v49  ;;  %v355_v51 = vrot.slane %v4445_v46, 1  ;;  %v4468_v55 = vld [vmem:[%s4335_s26 + $0x60] sm:$0xff]  ;;  %3818 = vmatmul.mubr.msk.f32.gmra.mxu0 %vm384_vm2, %v4438_v43  ;;  %v4475_v56 = vsel %vm301_vm1, %v352_v40, %v353_v45  ;;  %v318_v57 = vrot.slane %v4451_v48, 1  ;;  %v357_v58 = vrot.slane %v4462_v53, 1  ;;  %v4484_v61 = vld [vmem:[%s4335_s26 + $0x68] sm:$0xff]  ;;  %4012 = vmatprep.subr.msk.mxu0 %vm449_vm0, %v4396_v28 }
  0x1b   : > { %6139 = vst [vmem:[#allocation9_spill] sm:$0xff] %v4475_v56  ;;  %v358_v59 = vrot.slane %v4465_v54, 1  ;;  %v4481_v60 = vld [vmem:[%s4335_s26 + $0x58] sm:$0x3]  ;;  %3842 = vmatmul.mubr.msk.f32.gmra.mxu1 %vm384_vm2, %v4441_v44  ;;  %3820 = vmatprep.mubr.msk.f32.mxu0 %vm384_vm2, %v4456_v49  ;;  %v4493_v62 = vsel %vm301_vm1, %v313_v38, %v315_v50  ;;  %v322_v1 = vrot.slane %v4468_v55, 1  ;;  %v4501_v2 = vld [vmem:[%s4335_s26 + $0x120] sm:$0xff] }
  0x1c   : > { %6140 = vst [vmem:[#allocation10_spill] sm:$0xff] %v4493_v62  ;;  %v320_v63 = vrot.slane %v4481_v60, 1  ;;  %v4497_v0 = vld [vmem:[%s4335_s26 + $0x118] sm:$0x3]  ;;  %v4504_v6 = vld [vmem:[%s4335_s26 + $0x128] sm:$0xff]  ;;  %3844 = vmatprep.mubr.msk.f32.mxu1 %vm384_vm2, %v4475_v56  ;;  %v4509_v7 = vsel %vm301_vm1, %v353_v45, %v355_v51  ;;  %v4512_v9 = vsel %vm301_vm1, %v317_v52, %v318_v57  ;;  %v323_v12 = vrot.slane %v4484_v61, 1 }
  0x1d   : > { %6141 = vst [vmem:[#allocation11_spill] sm:$0xff] %v4509_v7  ;;  %6142 = vst [vmem:[#allocation12_spill] sm:$0xff] %v4512_v9  ;;  %v360_v11 = vrot.slane %v4497_v0, 1  ;;  %v4517_v15 = vld [vmem:[%s4335_s26 + $0x70] sm:$0x3]  ;;  %v4523_v18 = vsel %vm301_vm1, %v357_v58, %v358_v59  ;;  %v362_v23 = vrot.slane %v4501_v2, 1 }
  0x1e   : > { %v4520_v16 = vld [vmem:[%s4335_s26 + $0x130] sm:$0x3]  ;;  %6143 = vst [vmem:[#allocation13_spill] sm:$0xff] %v4523_v18  ;;  %v363_v24 = vrot.slane %v4504_v6, 1  ;;  %v4528_v25 = vld [vmem:[%s4335_s26 + $0x78] sm:$0xff]  ;;  %v4531_v30 = vld [vmem:[%s4335_s26 + $0x80] sm:$0xff]  ;;  %3821 = vmatmul.mubr.msk.f32.gmra.mxu0 %vm384_vm2, %v4493_v62  ;;  %v4546_v37 = vsel %vm301_vm1, %v318_v57, %v320_v63  ;;  %v4556_v50 = vsel %vm301_vm1, %v322_v1, %v323_v12 }
  0x1f   : > { %v4536_v31 = vld [vmem:[%s4335_s26 + $0x138] sm:$0xff]  ;;  %v4539_v32 = vld [vmem:[%s4335_s26 + $0x140] sm:$0xff]  ;;  %3845 = vmatmul.mubr.msk.f32.gmra.mxu1 %vm384_vm2, %v4509_v7  ;;  %3823 = vmatprep.mubr.msk.f32.mxu0 %vm384_vm2, %v4512_v9  ;;  %6144 = vst [vmem:[#allocation14_spill] sm:$0xff] %v4546_v37  ;;  %v325_v38 = vrot.slane %v4517_v15, 1  ;;  %v365_v40 = vrot.slane %v4520_v16, 1  ;;  %v4553_v45 = vsel %vm301_vm1, %v358_v59, %v360_v11  ;;  %6146 = vst [vmem:[#allocation16_spill] sm:$0xff] %v4556_v50 }
  0x20   : > { %3847 = vmatprep.mubr.msk.f32.mxu1 %vm384_vm2, %v4523_v18  ;;  %6145 = vst [vmem:[#allocation15_spill] sm:$0xff] %v4553_v45  ;;  %v327_v51 = vrot.slane %v4528_v25, 1  ;;  %v328_v52 = vrot.slane %v4531_v30, 1  ;;  %v4561_v57 = vld [vmem:[%s4335_s26 + $0x88] sm:$0x3]  ;;  %v4567_v63 = vsel %vm301_vm1, %v362_v23, %v363_v24  ;;  %v367_v7 = vrot.slane %v4536_v31, 1 }
  0x21   : > { %v4564_v58 = vld [vmem:[%s4335_s26 + $0x148] sm:$0x3]  ;;  %6147 = vst [vmem:[#allocation17_spill] sm:$0xff] %v4567_v63  ;;  %v368_v18 = vrot.slane %v4539_v32, 1  ;;  %v4572_v59 = vld [vmem:[%s4335_s26 + $0x90] sm:$0xff]  ;;  %v4575_v1 = vld [vmem:[%s4335_s26 + $0x98] sm:$0xff]  ;;  %v4590_v23 = vsel %vm301_vm1, %v323_v12, %v325_v38  ;;  %v4597_v29 = vsel %vm301_vm1, %v363_v24, %v365_v40 }
  0x22   : > { %3824 = vmatmul.mubr.msk.f32.gmra.mxu0 %vm384_vm2, %v4546_v37  ;;  %v4580_v11 = vld [vmem:[%s4335_s26 + $0x150] sm:$0xff]  ;;  %v4583_v56 = vld [vmem:[%s4335_s26 + $0x158] sm:$0xff]  ;;  %6149 = vst [vmem:[#allocation19_spill] sm:$0xff] %v4590_v23  ;;  %v330_v44 = vrot.slane %v4561_v57, 1  ;;  %v370_v42 = vrot.slane %v4564_v58, 1  ;;  %6150 = vst [vmem:[#allocation20_spill] sm:$0xff] %v4597_v29 }
  0x23   : > { %6148 = vst [vmem:[#allocation18_spill] sm:$0xff] %v4583_v56  ;;  %3848 = vmatmul.mubr.msk.f32.gmra.mxu1 %vm384_vm2, %v4553_v45  ;;  %3826 = vmatprep.mubr.msk.f32.mxu0 %vm384_vm2, %v4556_v50  ;;  %v4600_v45 = vsel %vm301_vm1, %v327_v51, %v328_v52  ;;  %v332_v22 = vrot.slane %v4572_v59, 1  ;;  %v333_v12 = vrot.slane %v4575_v1, 1  ;;  %v4605_v38 = vld [vmem:[%s4335_s26 + $0xa0] sm:$0x3]  ;;  %v4608_v50 = vsel %vm301_vm1, %v367_v7, %v368_v18  ;;  %v4616_v24 = vld [vmem:[%s4335_s26 + $0xa8] sm:$0xff] }
  0x24   : > { %3850 = vmatprep.mubr.msk.f32.mxu1 %vm384_vm2, %v4567_v63  ;;  %6151 = vst [vmem:[#allocation21_spill] sm:$0xff] %v4600_v45  ;;  %6152 = vst [vmem:[#allocation22_spill] sm:$0xff] %v4608_v50  ;;  %v372_v37 = vrot.slane %v4580_v11, 1  ;;  %v373_v9 = vrot.slane %v4583_v56, 1  ;;  %v4613_v63 = vld [vmem:[%s4335_s26 + $0x160] sm:$0x3]  ;;  %v4634_v7 = vsel %vm301_vm1, %v328_v52, %v330_v44  ;;  %v4637_v49 = vsel %vm301_vm1, %v368_v18, %v370_v42 }
  0x25   : > { %v4619_v40 = vld [vmem:[%s4335_s26 + $0xb0] sm:$0xff]  ;;  %v4624_v51 = vld [vmem:[%s4335_s26 + $0x168] sm:$0xff]  ;;  %6154 = vst [vmem:[#allocation24_spill] sm:$0xff] %v4634_v7  ;;  %6155 = vst [vmem:[#allocation25_spill] sm:$0xff] %v4637_v49  ;;  %v335_v43 = vrot.slane %v4605_v38, 1  ;;  %v375_v36 = vrot.slane %v4613_v63, 1 }
  0x26   : > { %3827 = vmatmul.mubr.msk.f32.gmra.mxu0 %vm384_vm2, %v4590_v23  ;;  %v4627_v62 = vld [vmem:[%s4335_s26 + $0x170] sm:$0xff]  ;;  %v4643_v23 = vsel %vm301_vm1, %v332_v22, %v333_v12  ;;  %v4649_v56 = vld [vmem:[%s4335_s26 + $0xb8] sm:$0x3]  ;;  %v4652_v44 = vsel %vm301_vm1, %v372_v37, %v373_v9  ;;  %v377_v42 = vrot.slane %v4624_v51, 1 }
  0x27   : > { %6153 = vst [vmem:[#allocation23_spill] sm:$0xff] %v4627_v62  ;;  %3851 = vmatmul.mubr.msk.f32.gmra.mxu1 %vm384_vm2, %v4597_v29  ;;  %3829 = vmatprep.mubr.msk.f32.mxu0 %vm384_vm2, %v4600_v45  ;;  %6156 = vst [vmem:[#allocation26_spill] sm:$0xff] %v4643_v23  ;;  %v337_v29 = vrot.slane %v4616_v24, 1  ;;  %v338_v45 = vrot.slane %v4619_v40, 1  ;;  %v378_v18 = vrot.slane %v4627_v62, 1  ;;  %v4666_v22 = vsel %vm301_vm1, %v333_v12, %v335_v43 }
  0x28   : > { %3853 = vmatprep.mubr.msk.f32.mxu1 %vm384_vm2, %v4608_v50  ;;  %6157 = vst [vmem:[#allocation27_spill] sm:$0xff] %v4652_v44  ;;  %v4657_v52 = vld [vmem:[%s4335_s26 + $0x178] sm:$0x3]  ;;  %6158 = vst [vmem:[#allocation28_spill] sm:$0xff] %v4666_v22  ;;  %v340_v37 = vrot.slane %v4649_v56, 1  ;;  %v971_v50 = vrot.slane %v4338_v3, 2  ;;  %v4673_v62 = vsel %vm301_vm1, %v373_v9, %v375_v36 }
  0x29   : > { %6159 = vst [vmem:[#allocation29_spill] sm:$0xff] %v4673_v62  ;;  %v4681_v43 = vsel %vm301_vm1, %v377_v42, %v378_v18  ;;  %v974_v12 = vrot.slane %v4353_v10, 2  ;;  %v976_v10 = vrot.slane %v4361_v14, 2  ;;  %v977_v42 = vrot.slane %v4366_v17, 2 }
  0x2a   : > { %3830 = vmatmul.mubr.msk.f32.gmra.mxu0 %vm384_vm2, %v4634_v7  ;;  %v4676_v7 = vsel %vm301_vm1, %v337_v29, %v338_v45  ;;  %6161 = vst [vmem:[#allocation31_spill] sm:$0xff] %v4681_v43  ;;  %v4691_v29 = vsel %vm301_vm1, %v338_v45, %v340_v37  ;;  %v979_v37 = vrot.slane %v4388_v26, 2  ;;  %v984_v26 = vrot.slane %v4429_v41, 2 }
  0x2b   : > { %3854 = vmatmul.mubr.msk.f32.gmra.mxu1 %vm384_vm2, %v4637_v49  ;;  %3832 = vmatprep.mubr.msk.f32.mxu0 %vm384_vm2, %v4643_v23  ;;  %6160 = vst [vmem:[#allocation30_spill] sm:$0xff] %v4676_v7  ;;  %v380_v49 = vrot.slane %v4657_v52, 1  ;;  %v972_v23 = vrot.slane %v4341_v4, 2  ;;  %6162 = vst [vmem:[#allocation32_spill] sm:$0xff] %v4691_v29  ;;  %v989_v41 = vrot.slane %v4481_v60, 2 }
  0x2c   : > { %3856 = vmatprep.mubr.msk.f32.mxu1 %vm384_vm2, %v4652_v44 }
  0x2d   : > { %v4696_v36 = vsel %vm301_vm1, %v378_v18, %v380_v49  ;;  %v973_v9 = vsel %vm970_vm3, %v971_v50, %v972_v23  ;;  %v975_v45 = vsel %vm970_vm3, %v972_v23, %v974_v12  ;;  %v981_v49 = vrot.slane %v4408_v33, 2  ;;  %v4732_v23 = vld [vmem:[%s6046_s1 + $0x18] sm:$0xf] }
  0x2e   : > { %3833 = vmatmul.mubr.msk.f32.gmra.mxu0 %vm384_vm2, %v4666_v22  ;;  %6163 = vst [vmem:[#allocation33_spill] sm:$0xff] %v4696_v36  ;;  %v982_v50 = vrot.slane %v4411_v34, 2  ;;  %v4714_v18 = vsel %vm970_vm3, %v976_v10, %v977_v42  ;;  %v987_v12 = vrot.slane %v4451_v48, 2 }
  0x2f   : > { %3857 = vmatmul.mubr.msk.f32.gmra.mxu1 %vm384_vm2, %v4673_v62  ;;  %3835 = vmatprep.mubr.msk.f32.mxu0 %vm384_vm2, %v4676_v7 }
  0x30   : > { %3859 = vmatprep.mubr.msk.f32.mxu1 %vm384_vm2, %v4681_v43  ;;  %v4773_v60 = vsel %vm970_vm3, %v987_v12, %v989_v41  ;;  %v1001_v41 = vrot.slane %v4572_v59, 2 }
  0x32   : > { %3836 = vmatmul.mubr.msk.f32.gmra.mxu0 %vm384_vm2, %v4691_v29 }
  0x33   : > { %3860 = vmatmul.mubr.msk.f32.gmra.mxu1 %vm384_vm2, %v4696_v36  ;;  %3914 = vmatprep.mubr.msk.f32.mxu0 %vm384_vm2, %v973_v9  ;;  %v4719_v9 = vld [vmem:[%s6046_s1 + $0x14] sm:$0xf] }
  0x34   : > { %3864 = vmatprep.mubr.msk.f32.mxu1 %vm384_vm2, %v4338_v3  ;;  %v4726_v3 = vsel %vm970_vm3, %v977_v42, %v979_v37  ;;  %v991_v42 = vrot.slane %v4468_v55, 2  ;;  %v994_v37 = vrot.slane %v4517_v15, 2 }
  0x36   : > { %3915 = vmatmul.mubr.msk.f32.vlgmr.msra.gmra.mxu0 %vm384_vm2, %v975_v45  ;;  %v992_v45 = vrot.slane %v4484_v61, 2 }
  0x37   : > { %3865 = vmatmul.mubr.msk.f32.vlgmr.msra.gmra.mxu1 %vm384_vm2, %v4341_v4  ;;  %4013 = vmatpush3.msk.msra.mxu0 %vm449_vm0, %v4396_v28  ;;  %v4739_v4 = vsel %vm970_vm3, %v981_v49, %v982_v50  ;;  %v986_v28 = vrot.slane %v4448_v47, 2 }
  0x38   : > { %3963 = vmatpush3.msk.msra.mxu1 %vm449_vm0, %v4378_v21  ;;  %3867 = vmatprep.mubr.msk.f32.mxu1 %vm384_vm2, %v4361_v14  ;;  %v4756_v21 = vsel %vm970_vm3, %v982_v50, %v984_v26  ;;  %v4779_v49 = vsel %vm970_vm3, %v991_v42, %v992_v45  ;;  %v996_v50 = vrot.slane %v4528_v25, 2  ;;  %v997_v26 = vrot.slane %v4531_v30, 2 }
  0x39   : > { %3917 = vmatprep.mubr.msk.f32.mxu0 %vm384_vm2, %v4714_v18  ;;  %4062 = vmatprep.subr.msk.mxu1 %vm449_vm0, %v4719_v9  ;;  %v4762_v10 = vsel %vm970_vm3, %v986_v28, %v987_v12  ;;  %v4790_v15 = vsel %vm970_vm3, %v992_v45, %v994_v37  ;;  %v999_v28 = vrot.slane %v4561_v57, 2  ;;  %v1002_v42 = vrot.slane %v4575_v1, 2 }
  0x3a   : > { %3918 = vmatmul.mubr.msk.f32.gmra.mxu0 %vm384_vm2, %v4726_v3  ;;  %4112 = vmatprep.subr.msk.mxu0 %vm449_vm0, %v4732_v23  ;;  %6164 = vst [vmem:[#allocation34_spill] sm:$0xff] %v4790_v15  ;;  %v4796_v12 = vsel %vm970_vm3, %v996_v50, %v997_v26  ;;  %v1004_v45 = vrot.slane %v4605_v38, 2  ;;  %v1006_v50 = vrot.slane %v4616_v24, 2 }
  0x3b   : > { %3868 = vmatmul.mubr.msk.f32.gmra.mxu1 %vm384_vm2, %v4366_v17  ;;  %3920 = vmatprep.mubr.msk.f32.mxu0 %vm384_vm2, %v4739_v4  ;;  %v4807_v57 = vsel %vm970_vm3, %v997_v26, %v999_v28  ;;  %v4813_v37 = vsel %vm970_vm3, %v1001_v41, %v1002_v42  ;;  %v1009_v26 = vrot.slane %v4649_v56, 2  ;;  %v1011_v41 = vrot.slane %v4344_v5, 2 }
  0x3c   : > { %3870 = vmatprep.mubr.msk.f32.mxu1 %vm384_vm2, %v4408_v33  ;;  %6165 = vst [vmem:[#allocation35_spill] sm:$0xff] %v4807_v57  ;;  %v4824_v38 = vsel %vm970_vm3, %v1002_v42, %v1004_v45  ;;  %v1014_v42 = vrot.slane %v4358_v13, 2 }
  0x3d   : > { %6166 = vst [vmem:[#allocation36_spill] sm:$0xff] %v4824_v38 }
  0x3e   : > { %3921 = vmatmul.mubr.msk.f32.gmra.mxu0 %vm384_vm2, %v4756_v21 }
  0x3f   : > { %3871 = vmatmul.mubr.msk.f32.gmra.mxu1 %vm384_vm2, %v4411_v34  ;;  %3923 = vmatprep.mubr.msk.f32.mxu0 %vm384_vm2, %v4762_v10 }
  0x40   : > { %3873 = vmatprep.mubr.msk.f32.mxu1 %vm384_vm2, %v4448_v47 }
  0x42   : > { %3924 = vmatmul.mubr.msk.f32.gmra.mxu0 %vm384_vm2, %v4773_v60 }
  0x43   : > { %3874 = vmatmul.mubr.msk.f32.gmra.mxu1 %vm384_vm2, %v4451_v48  ;;  %3926 = vmatprep.mubr.msk.f32.mxu0 %vm384_vm2, %v4779_v49 }
  0x44   : > { %3876 = vmatprep.mubr.msk.f32.mxu1 %vm384_vm2, %v4468_v55 }
  0x46   : > { %3927 = vmatmul.mubr.msk.f32.gmra.mxu0 %vm384_vm2, %v4790_v15  ;;  %v1007_v15 = vrot.slane %v4619_v40, 2 }
  0x47   : > { %3877 = vmatmul.mubr.msk.f32.gmra.mxu1 %vm384_vm2, %v4484_v61  ;;  %3929 = vmatprep.mubr.msk.f32.mxu0 %vm384_vm2, %v4796_v12 }
  0x48   : > { %3879 = vmatprep.mubr.msk.f32.mxu1 %vm384_vm2, %v4528_v25  ;;  %v4830_v28 = vsel %vm970_vm3, %v1006_v50, %v1007_v15  ;;  %v4841_v56 = vsel %vm970_vm3, %v1007_v15, %v1009_v26  ;;  %v1016_v50 = vrot.slane %v4370_v19, 2  ;;  %v1019_v15 = vrot.slane %v4391_v27, 2 }
  0x49   : > { %6167 = vst [vmem:[#allocation37_spill] sm:$0xff] %v4841_v56 }
  0x4a   : > { %3930 = vmatmul.mubr.msk.f32.gmra.mxu0 %vm384_vm2, %v4807_v57  ;;  %v1012_v57 = vrot.slane %v4349_v8, 2 }
  0x4b   : > { %3880 = vmatmul.mubr.msk.f32.gmra.mxu1 %vm384_vm2, %v4531_v30  ;;  %3932 = vmatprep.mubr.msk.f32.mxu0 %vm384_vm2, %v4813_v37 }
  0x4c   : > { %3882 = vmatprep.mubr.msk.f32.mxu1 %vm384_vm2, %v4572_v59  ;;  %v4847_v45 = vsel %vm970_vm3, %v1011_v41, %v1012_v57  ;;  %v4858_v13 = vsel %vm970_vm3, %v1012_v57, %v1014_v42  ;;  %v1021_v41 = vrot.slane %v4414_v35, 2  ;;  %v1024_v57 = vrot.slane %v4445_v46, 2 }
  0x4d   : > { %6168 = vst [vmem:[#allocation38_spill] sm:$0xff] %v4858_v13 }
  0x4e   : > { %3933 = vmatmul.mubr.msk.f32.gmra.mxu0 %vm384_vm2, %v4824_v38  ;;  %v1017_v38 = vrot.slane %v4373_v20, 2 }
  0x4f   : > { %3883 = vmatmul.mubr.msk.f32.gmra.mxu1 %vm384_vm2, %v4575_v1  ;;  %3935 = vmatprep.mubr.msk.f32.mxu0 %vm384_vm2, %v4830_v28 }
  0x50   : > { %3885 = vmatprep.mubr.msk.f32.mxu1 %vm384_vm2, %v4616_v24  ;;  %v4864_v26 = vsel %vm970_vm3, %v1016_v50, %v1017_v38  ;;  %v4875_v27 = vsel %vm970_vm3, %v1017_v38, %v1019_v15  ;;  %v1026_v50 = vrot.slane %v4462_v53, 2  ;;  %v1029_v38 = vrot.slane %v4497_v0, 2 }
  0x51   : > { %6169 = vst [vmem:[#allocation39_spill] sm:$0xff] %v4875_v27 }
  0x52   : > { %3936 = vmatmul.mubr.msk.f32.gmra.mxu0 %vm384_vm2, %v4841_v56  ;;  %v1022_v56 = vrot.slane %v4425_v39, 2 }
  0x53   : > { %3886 = vmatmul.mubr.msk.f32.gmra.mxu1 %vm384_vm2, %v4619_v40  ;;  %3938 = vmatprep.mubr.msk.f32.mxu0 %vm384_vm2, %v4847_v45 }
  0x54   : > { %3888 = vmatprep.mubr.msk.f32.mxu1 %vm384_vm2, %v4344_v5  ;;  %v4881_v42 = vsel %vm970_vm3, %v1021_v41, %v1022_v56  ;;  %v4892_v46 = vsel %vm970_vm3, %v1022_v56, %v1024_v57  ;;  %v1031_v41 = vrot.slane %v4501_v2, 2  ;;  %v1034_v56 = vrot.slane %v4520_v16, 2 }
  0x55   : > { %6170 = vst [vmem:[#allocation40_spill] sm:$0xff] %v4892_v46 }
  0x56   : > { %3939 = vmatmul.mubr.msk.f32.gmra.mxu0 %vm384_vm2, %v4858_v13  ;;  %v1027_v13 = vrot.slane %v4465_v54, 2 }
  0x57   : > { %3889 = vmatmul.mubr.msk.f32.gmra.mxu1 %vm384_vm2, %v4349_v8  ;;  %3941 = vmatprep.mubr.msk.f32.mxu0 %vm384_vm2, %v4864_v26 }
  0x58   : > { %3891 = vmatprep.mubr.msk.f32.mxu1 %vm384_vm2, %v4370_v19  ;;  %v4898_v15 = vsel %vm970_vm3, %v1026_v50, %v1027_v13  ;;  %v4909_v0 = vsel %vm970_vm3, %v1027_v13, %v1029_v38  ;;  %v1036_v50 = vrot.slane %v4536_v31, 2  ;;  %v1039_v13 = vrot.slane %v4564_v58, 2 }
  0x59   : > { %6171 = vst [vmem:[#allocation41_spill] sm:$0xff] %v4898_v15  ;;  %6172 = vst [vmem:[#allocation42_spill] sm:$0xff] %v4909_v0 }
  0x5a   : > { %3942 = vmatmul.mubr.msk.f32.gmra.mxu0 %vm384_vm2, %v4875_v27  ;;  %v1032_v27 = vrot.slane %v4504_v6, 2 }
  0x5b   : > { %3892 = vmatmul.mubr.msk.f32.gmra.mxu1 %vm384_vm2, %v4373_v20  ;;  %3944 = vmatprep.mubr.msk.f32.mxu0 %vm384_vm2, %v4881_v42 }
  0x5c   : > { %3894 = vmatprep.mubr.msk.f32.mxu1 %vm384_vm2, %v4414_v35  ;;  %v4915_v57 = vsel %vm970_vm3, %v1031_v41, %v1032_v27  ;;  %v4926_v16 = vsel %vm970_vm3, %v1032_v27, %v1034_v56  ;;  %v1041_v41 = vrot.slane %v4580_v11, 2  ;;  %v1044_v27 = vrot.slane %v4613_v63, 2 }
  0x5d   : > { %6173 = vst [vmem:[#allocation43_spill] sm:$0xff] %v4915_v57  ;;  %6174 = vst [vmem:[#allocation44_spill] sm:$0xff] %v4926_v16 }
  0x5e   : > { %3945 = vmatmul.mubr.msk.f32.gmra.mxu0 %vm384_vm2, %v4892_v46  ;;  %v1037_v46 = vrot.slane %v4539_v32, 2 }
  0x5f   : > { %3895 = vmatmul.mubr.msk.f32.gmra.mxu1 %vm384_vm2, %v4425_v39  ;;  %3947 = vmatprep.mubr.msk.f32.mxu0 %vm384_vm2, %v4898_v15 }
  0x60   : > { %3897 = vmatprep.mubr.msk.f32.mxu1 %vm384_vm2, %v4462_v53  ;;  %v4932_v38 = vsel %vm970_vm3, %v1036_v50, %v1037_v46  ;;  %v4943_v58 = vsel %vm970_vm3, %v1037_v46, %v1039_v13  ;;  %v1046_v50 = vrot.slane %v4624_v51, 2  ;;  %v1049_v46 = vrot.slane %v4657_v52, 2  ;;  %v6178_v52 = vld [vmem:[#allocation4_spill] sm:$0xff] }
  0x62   : > { %3948 = vmatmul.mubr.msk.f32.gmra.mxu0 %vm384_vm2, %v4909_v0  ;;  %v6175_v0 = vld [vmem:[#allocation18_spill] sm:$0xff] }
  0x63   : > { %3898 = vmatmul.mubr.msk.f32.gmra.mxu1 %vm384_vm2, %v4465_v54  ;;  %3950 = vmatprep.mubr.msk.f32.mxu0 %vm384_vm2, %v4915_v57  ;;  %v1042_v15 = vrot.slane %v6175_v0, 2 }
  0x64   : > { %3900 = vmatprep.mubr.msk.f32.mxu1 %vm384_vm2, %v4501_v2 }
  0x65   : > { %v4949_v56 = vsel %vm970_vm3, %v1041_v41, %v1042_v15  ;;  %v4960_v63 = vsel %vm970_vm3, %v1042_v15, %v1044_v27  ;;  %v6179_v41 = vld [vmem:[#allocation6_spill] sm:$0xff] }
  0x66   : > { %3951 = vmatmul.mubr.msk.f32.gmra.mxu0 %vm384_vm2, %v4926_v16  ;;  %v6176_v16 = vld [vmem:[#allocation23_spill] sm:$0xff]  ;;  %v5001_v27 = vld [vmem:[%s6046_s1 + $0x20] sm:$0xf] }
  0x67   : > { %3901 = vmatmul.mubr.msk.f32.gmra.mxu1 %vm384_vm2, %v4504_v6  ;;  %3953 = vmatprep.mubr.msk.f32.mxu0 %vm384_vm2, %v4932_v38  ;;  %v1047_v57 = vrot.slane %v6176_v16, 2 }
  0x68   : > { %3903 = vmatprep.mubr.msk.f32.mxu1 %vm384_vm2, %v4536_v31 }
  0x69   : > { %v4966_v13 = vsel %vm970_vm3, %v1046_v50, %v1047_v57  ;;  %v4975_v15 = vsel %vm970_vm3, %v1047_v57, %v1049_v46  ;;  %v4992_v57 = vld [vmem:[%s6046_s1 + $0x1c] sm:$0xf]  ;;  %v6184_v50 = vld [vmem:[#allocation16_spill] sm:$0xff]  ;;  %v6185_v46 = vld [vmem:[#allocation19_spill] sm:$0xff] }
  0x6a   : > { %3954 = vmatmul.mubr.msk.f32.gmra.mxu0 %vm384_vm2, %v4943_v58  ;;  %6177 = vst [vmem:[#allocation18_spill] sm:$0xff] %v4975_v15 }
  0x6b   : > { %3904 = vmatmul.mubr.msk.f32.gmra.mxu1 %vm384_vm2, %v4539_v32  ;;  %3956 = vmatprep.mubr.msk.f32.mxu0 %vm384_vm2, %v4949_v56 }
  0x6c   : > { %3906 = vmatprep.mubr.msk.f32.mxu1 %vm384_vm2, %v4580_v11 }
  0x6e   : > { %3957 = vmatmul.mubr.msk.f32.gmra.mxu0 %vm384_vm2, %v4960_v63 }
  0x6f   : > { %3907 = vmatmul.mubr.msk.f32.gmra.mxu1 %vm384_vm2, %v6175_v0  ;;  %3959 = vmatprep.mubr.msk.f32.mxu0 %vm384_vm2, %v4966_v13 }
  0x70   : > { %3909 = vmatprep.mubr.msk.f32.mxu1 %vm384_vm2, %v4624_v51 }
  0x72   : > { %3960 = vmatmul.mubr.msk.f32.gmra.mxu0 %vm384_vm2, %v4975_v15 }
  0x73   : > { %3910 = vmatmul.mubr.msk.f32.gmra.mxu1 %vm384_vm2, %v6176_v16  ;;  %4014 = vmatprep.mubr.msk.f32.mxu0 %vm384_vm2, %v6178_v52  ;;  %v6186_v52 = vld [vmem:[#allocation21_spill] sm:$0xff] }
  0x74   : > { %3964 = vmatprep.mubr.msk.f32.mxu1 %vm384_vm2, %v4361_v14  ;;  %v6180_v14 = vld [vmem:[#allocation8_spill] sm:$0xff] }
  0x76   : > { %4015 = vmatmul.mubr.msk.f32.vlgmr.msra.gmra.mxu0 %vm384_vm2, %v6179_v41  ;;  %v6187_v41 = vld [vmem:[#allocation24_spill] sm:$0xff] }
  0x77   : > { %3965 = vmatmul.mubr.msk.f32.vlgmr.msra.gmra.mxu1 %vm384_vm2, %v4366_v17  ;;  %4113 = vmatpush3.msk.msra.mxu0 %vm449_vm0, %v4732_v23  ;;  %v6181_v17 = vld [vmem:[#allocation10_spill] sm:$0xff]  ;;  %v6182_v23 = vld [vmem:[#allocation12_spill] sm:$0xff] }
  0x78   : > { %4063 = vmatpush3.msk.msra.mxu1 %vm449_vm0, %v4719_v9  ;;  %3967 = vmatprep.mubr.msk.f32.mxu1 %vm384_vm2, %v4408_v33  ;;  %v6183_v9 = vld [vmem:[#allocation14_spill] sm:$0xff] }
  0x79   : > { %4017 = vmatprep.mubr.msk.f32.mxu0 %vm384_vm2, %v6180_v14  ;;  %4162 = vmatprep.subr.msk.mxu1 %vm449_vm0, %v4992_v57 }
  0x7a   : > { %4018 = vmatmul.mubr.msk.f32.gmra.mxu0 %vm384_vm2, %v6181_v17  ;;  %4212 = vmatprep.subr.msk.mxu0 %vm449_vm0, %v5001_v27 }
  0x7b   : > { %3968 = vmatmul.mubr.msk.f32.gmra.mxu1 %vm384_vm2, %v4411_v34  ;;  %4020 = vmatprep.mubr.msk.f32.mxu0 %vm384_vm2, %v6182_v23 }
  0x7c   : > { %3970 = vmatprep.mubr.msk.f32.mxu1 %vm384_vm2, %v4448_v47 }
  0x7e   : > { %4021 = vmatmul.mubr.msk.f32.gmra.mxu0 %vm384_vm2, %v6183_v9 }
  0x7f   : > { %3971 = vmatmul.mubr.msk.f32.gmra.mxu1 %vm384_vm2, %v4451_v48  ;;  %4023 = vmatprep.mubr.msk.f32.mxu0 %vm384_vm2, %v6184_v50  ;;  %v6188_v50 = vld [vmem:[#allocation26_spill] sm:$0xff] }
  0x80   : > { %3973 = vmatprep.mubr.msk.f32.mxu1 %vm384_vm2, %v4468_v55 }
  0x82   : > { %4024 = vmatmul.mubr.msk.f32.gmra.mxu0 %vm384_vm2, %v6185_v46 }
  0x83   : > { %3974 = vmatmul.mubr.msk.f32.gmra.mxu1 %vm384_vm2, %v4484_v61  ;;  %4026 = vmatprep.mubr.msk.f32.mxu0 %vm384_vm2, %v6186_v52  ;;  %v5118_v52 = vld [vmem:[%s4335_s26 + $0x190] sm:$0x3] }
  0x84   : > { %3976 = vmatprep.mubr.msk.f32.mxu1 %vm384_vm2, %v4528_v25 }
  0x86   : > { %4027 = vmatmul.mubr.msk.f32.gmra.mxu0 %vm384_vm2, %v6187_v41  ;;  %v5105_v41 = vld [vmem:[%s4335_s26 + $0x188] sm:$0xff] }
  0x87   : > { %3977 = vmatmul.mubr.msk.f32.gmra.mxu1 %vm384_vm2, %v4531_v30  ;;  %4029 = vmatprep.mubr.msk.f32.mxu0 %vm384_vm2, %v6188_v50  ;;  %v6189_v50 = vld [vmem:[#allocation2_spill] sm:$0xff] }
  0x88   : > { %3979 = vmatprep.mubr.msk.f32.mxu1 %vm384_vm2, %v4572_v59 }
  0x8a   : > { %4030 = vmatmul.mubr.msk.f32.gmra.mxu0 %vm384_vm2, %v4666_v22  ;;  %v6190_v22 = vld [vmem:[#allocation3_spill] sm:$0xff] }
  0x8b   : > { %3980 = vmatmul.mubr.msk.f32.gmra.mxu1 %vm384_vm2, %v4575_v1  ;;  %4032 = vmatprep.mubr.msk.f32.mxu0 %vm384_vm2, %v4676_v7  ;;  %v6191_v7 = vld [vmem:[#allocation5_spill] sm:$0xff] }
  0x8c   : > { %3982 = vmatprep.mubr.msk.f32.mxu1 %vm384_vm2, %v4616_v24 }
  0x8e   : > { %4033 = vmatmul.mubr.msk.f32.gmra.mxu0 %vm384_vm2, %v4691_v29  ;;  %v6192_v29 = vld [vmem:[#allocation7_spill] sm:$0xff] }
  0x8f   : > { %3983 = vmatmul.mubr.msk.f32.gmra.mxu1 %vm384_vm2, %v4619_v40  ;;  %4035 = vmatprep.mubr.msk.f32.mxu0 %vm384_vm2, %v6189_v50  ;;  %v6193_v50 = vld [vmem:[#allocation9_spill] sm:$0xff] }
  0x90   : > { %3985 = vmatprep.mubr.msk.f32.mxu1 %vm384_vm2, %v4344_v5 }
  0x92   : > { %4036 = vmatmul.mubr.msk.f32.gmra.mxu0 %vm384_vm2, %v6190_v22  ;;  %v6194_v22 = vld [vmem:[#allocation11_spill] sm:$0xff] }
  0x93   : > { %3986 = vmatmul.mubr.msk.f32.gmra.mxu1 %vm384_vm2, %v4349_v8  ;;  %4038 = vmatprep.mubr.msk.f32.mxu0 %vm384_vm2, %v6191_v7  ;;  %v6195_v7 = vld [vmem:[#allocation13_spill] sm:$0xff] }
  0x94   : > { %3988 = vmatprep.mubr.msk.f32.mxu1 %vm384_vm2, %v4370_v19 }
  0x96   : > { %4039 = vmatmul.mubr.msk.f32.gmra.mxu0 %vm384_vm2, %v6192_v29  ;;  %v6196_v29 = vld [vmem:[#allocation15_spill] sm:$0xff] }
  0x97   : > { %3989 = vmatmul.mubr.msk.f32.gmra.mxu1 %vm384_vm2, %v4373_v20  ;;  %4041 = vmatprep.mubr.msk.f32.mxu0 %vm384_vm2, %v6193_v50  ;;  %v6197_v50 = vld [vmem:[#allocation17_spill] sm:$0xff] }
  0x98   : > { %3991 = vmatprep.mubr.msk.f32.mxu1 %vm384_vm2, %v4414_v35 }
  0x9a   : > { %4042 = vmatmul.mubr.msk.f32.gmra.mxu0 %vm384_vm2, %v6194_v22  ;;  %v6198_v22 = vld [vmem:[#allocation20_spill] sm:$0xff] }
  0x9b   : > { %3992 = vmatmul.mubr.msk.f32.gmra.mxu1 %vm384_vm2, %v4425_v39  ;;  %4044 = vmatprep.mubr.msk.f32.mxu0 %vm384_vm2, %v6195_v7  ;;  %v6199_v7 = vld [vmem:[#allocation22_spill] sm:$0xff] }
  0x9c   : > { %3994 = vmatprep.mubr.msk.f32.mxu1 %vm384_vm2, %v4462_v53 }
  0x9e   : > { %4045 = vmatmul.mubr.msk.f32.gmra.mxu0 %vm384_vm2, %v6196_v29  ;;  %v5102_v29 = vld [vmem:[%s4335_s26 + $0x180] sm:$0xff] }
  0x9f   : > { %3995 = vmatmul.mubr.msk.f32.gmra.mxu1 %vm384_vm2, %v4465_v54  ;;  %4047 = vmatprep.mubr.msk.f32.mxu0 %vm384_vm2, %v6197_v50  ;;  %v6200_v50 = vld [vmem:[#allocation25_spill] sm:$0xff] }
  0xa0   : > { %3997 = vmatprep.mubr.msk.f32.mxu1 %vm384_vm2, %v4501_v2 }
  0xa2   : > { %4048 = vmatmul.mubr.msk.f32.gmra.mxu0 %vm384_vm2, %v6198_v22  ;;  %v1647_v22 = vrot.slane %v5105_v41, 1 }
  0xa3   : > { %3998 = vmatmul.mubr.msk.f32.gmra.mxu1 %vm384_vm2, %v4504_v6  ;;  %4050 = vmatprep.mubr.msk.f32.mxu0 %vm384_vm2, %v6199_v7  ;;  %v1646_v7 = vrot.slane %v5102_v29, 1 }
  0xa4   : > { %4000 = vmatprep.mubr.msk.f32.mxu1 %vm384_vm2, %v4536_v31 }
  0xa6   : > { %4051 = vmatmul.mubr.msk.f32.gmra.mxu0 %vm384_vm2, %v6200_v50  ;;  %v5130_v50 = vsel %vm301_vm1, %v1646_v7, %v1647_v22 }
  0xa7   : > { %4001 = vmatmul.mubr.msk.f32.gmra.mxu1 %vm384_vm2, %v4539_v32  ;;  %4053 = vmatprep.mubr.msk.f32.mxu0 %vm384_vm2, %v4652_v44  ;;  %v1649_v44 = vrot.slane %v5118_v52, 1  ;;  %6201 = vst [vmem:[#allocation23_spill] sm:$0xff] %v5130_v50 }
  0xa8   : > { %4003 = vmatprep.mubr.msk.f32.mxu1 %vm384_vm2, %v4580_v11 }
  0xaa   : > { %4054 = vmatmul.mubr.msk.f32.gmra.mxu0 %vm384_vm2, %v4673_v62  ;;  %v5139_v62 = vsel %vm301_vm1, %v1647_v22, %v1649_v44  ;;  %v6213_v22 = vld [vmem:[#allocation44_spill] sm:$0xff] }
  0xab   : > { %4004 = vmatmul.mubr.msk.f32.gmra.mxu1 %vm384_vm2, %v6175_v0  ;;  %4056 = vmatprep.mubr.msk.f32.mxu0 %vm384_vm2, %v4681_v43  ;;  %6202 = vst [vmem:[#allocation4_spill] sm:$0xff] %v5139_v62 }
  0xac   : > { %4006 = vmatprep.mubr.msk.f32.mxu1 %vm384_vm2, %v4624_v51 }
  0xae   : > { %4057 = vmatmul.mubr.msk.f32.gmra.mxu0 %vm384_vm2, %v4696_v36  ;;  %v5316_v36 = vld [vmem:[%s4335_s26 + $0x198] sm:$0xff] }
  0xaf   : > { %4007 = vmatmul.mubr.msk.f32.gmra.mxu1 %vm384_vm2, %v6176_v16  ;;  %4059 = vmatprep.mubr.msk.f32.mxu0 %vm384_vm2, %v5130_v50 }
  0xb0   : > { %4009 = vmatprep.mubr.msk.f32.mxu1 %vm384_vm2, %v5102_v29 }
  0xb2   : > { %4060 = vmatmul.mubr.msk.f32.gmra.mxu0 %vm384_vm2, %v5139_v62 }
  0xb3   : > { %4010 = vmatmul.mubr.msk.f32.gmra.mxu1 %vm384_vm2, %v5105_v41  ;;  %4114 = vmatprep.mubr.msk.f32.mxu0 %vm384_vm2, %v4408_v33  ;;  %v6203_v33 = vld [vmem:[#allocation34_spill] sm:$0xff] }
  0xb4   : > { %4064 = vmatprep.mubr.msk.f32.mxu1 %vm384_vm2, %v4714_v18 }
  0xb6   : > { %4115 = vmatmul.mubr.msk.f32.vlgmr.msra.gmra.mxu0 %vm384_vm2, %v4411_v34  ;;  %v6204_v34 = vld [vmem:[#allocation35_spill] sm:$0xff] }
  0xb7   : > { %4065 = vmatmul.mubr.msk.f32.vlgmr.msra.gmra.mxu1 %vm384_vm2, %v4726_v3  ;;  %4213 = vmatpush3.msk.msra.mxu0 %vm449_vm0, %v5001_v27 }
  0xb8   : > { %4163 = vmatpush3.msk.msra.mxu1 %vm449_vm0, %v4992_v57  ;;  %4067 = vmatprep.mubr.msk.f32.mxu1 %vm384_vm2, %v4739_v4  ;;  %v1917_v57 = vrot.slane %v5102_v29, 2 }
  0xb9   : > { %4117 = vmatprep.mubr.msk.f32.mxu0 %vm384_vm2, %v4448_v47  ;;  %v6205_v47 = vld [vmem:[#allocation36_spill] sm:$0xff] }
  0xba   : > { %4118 = vmatmul.mubr.msk.f32.gmra.mxu0 %vm384_vm2, %v4451_v48  ;;  %v6206_v48 = vld [vmem:[#allocation37_spill] sm:$0xff] }
  0xbb   : > { %4068 = vmatmul.mubr.msk.f32.gmra.mxu1 %vm384_vm2, %v4756_v21  ;;  %4120 = vmatprep.mubr.msk.f32.mxu0 %vm384_vm2, %v4468_v55  ;;  %v6207_v55 = vld [vmem:[#allocation38_spill] sm:$0xff] }
  0xbc   : > { %4070 = vmatprep.mubr.msk.f32.mxu1 %vm384_vm2, %v4762_v10 }
  0xbe   : > { %4121 = vmatmul.mubr.msk.f32.gmra.mxu0 %vm384_vm2, %v4484_v61 }
  0xbf   : > { %4071 = vmatmul.mubr.msk.f32.gmra.mxu1 %vm384_vm2, %v4773_v60  ;;  %4123 = vmatprep.mubr.msk.f32.mxu0 %vm384_vm2, %v4528_v25  ;;  %v6209_v25 = vld [vmem:[#allocation40_spill] sm:$0xff] }
  0xc0   : > { %4073 = vmatprep.mubr.msk.f32.mxu1 %vm384_vm2, %v4779_v49 }
  0xc2   : > { %4124 = vmatmul.mubr.msk.f32.gmra.mxu0 %vm384_vm2, %v4531_v30  ;;  %v6210_v30 = vld [vmem:[#allocation41_spill] sm:$0xff] }
  0xc3   : > { %4074 = vmatmul.mubr.msk.f32.gmra.mxu1 %vm384_vm2, %v6203_v33  ;;  %4126 = vmatprep.mubr.msk.f32.mxu0 %vm384_vm2, %v4572_v59 }
  0xc4   : > { %4076 = vmatprep.mubr.msk.f32.mxu1 %vm384_vm2, %v4796_v12 }
  0xc6   : > { %4127 = vmatmul.mubr.msk.f32.gmra.mxu0 %vm384_vm2, %v4575_v1 }
  0xc7   : > { %4077 = vmatmul.mubr.msk.f32.gmra.mxu1 %vm384_vm2, %v6204_v34  ;;  %4129 = vmatprep.mubr.msk.f32.mxu0 %vm384_vm2, %v4616_v24  ;;  %v6211_v24 = vld [vmem:[#allocation42_spill] sm:$0xff] }
  0xc8   : > { %4079 = vmatprep.mubr.msk.f32.mxu1 %vm384_vm2, %v4813_v37 }
  0xca   : > { %4130 = vmatmul.mubr.msk.f32.gmra.mxu0 %vm384_vm2, %v4619_v40  ;;  %v6212_v40 = vld [vmem:[#allocation43_spill] sm:$0xff] }
  0xcb   : > { %4080 = vmatmul.mubr.msk.f32.gmra.mxu1 %vm384_vm2, %v6205_v47  ;;  %4132 = vmatprep.mubr.msk.f32.mxu0 %vm384_vm2, %v4344_v5 }
  0xcc   : > { %4082 = vmatprep.mubr.msk.f32.mxu1 %vm384_vm2, %v4830_v28 }
  0xce   : > { %4133 = vmatmul.mubr.msk.f32.gmra.mxu0 %vm384_vm2, %v4349_v8 }
  0xcf   : > { %4083 = vmatmul.mubr.msk.f32.gmra.mxu1 %vm384_vm2, %v6206_v48  ;;  %4135 = vmatprep.mubr.msk.f32.mxu0 %vm384_vm2, %v4370_v19  ;;  %v6208_v19 = vld [vmem:[#allocation39_spill] sm:$0xff] }
  0xd0   : > { %4085 = vmatprep.mubr.msk.f32.mxu1 %vm384_vm2, %v4847_v45 }
  0xd2   : > { %4136 = vmatmul.mubr.msk.f32.gmra.mxu0 %vm384_vm2, %v4373_v20 }
  0xd3   : > { %4086 = vmatmul.mubr.msk.f32.gmra.mxu1 %vm384_vm2, %v6207_v55  ;;  %4138 = vmatprep.mubr.msk.f32.mxu0 %vm384_vm2, %v4414_v35 }
  0xd4   : > { %4088 = vmatprep.mubr.msk.f32.mxu1 %vm384_vm2, %v4864_v26 }
  0xd6   : > { %v5219_v5 = vpop.f32.mrf.mxu0  ;;  %4139 = vmatmul.mubr.msk.f32.gmra.mxu0 %vm384_vm2, %v4425_v39 }
  0xd7   : > { %v5223_v8 = vpop.f32.mrf.mxu1  ;;  %4089 = vmatmul.mubr.msk.f32.gmra.mxu1 %vm384_vm2, %v6208_v19  ;;  %4141 = vmatprep.mubr.msk.f32.mxu0 %vm384_vm2, %v4462_v53 }
  0xd8   : > { %v5229_v20 = vpop.f32.mrf.mxu0  ;;  %4091 = vmatprep.mubr.msk.f32.mxu1 %vm384_vm2, %v4881_v42 }
  0xd9   : > { %v5233_v35 = vpop.f32.mrf.mxu1 }
  0xda   : > { %v5235_v61 = vpop.f32.mrf.mxu0  ;;  %4142 = vmatmul.mubr.msk.f32.gmra.mxu0 %vm384_vm2, %v4465_v54 }
  0xdb   : > { %v5239_v39 = vpop.f32.mrf.mxu1  ;;  %4092 = vmatmul.mubr.msk.f32.gmra.mxu1 %vm384_vm2, %v6209_v25  ;;  %4144 = vmatprep.mubr.msk.f32.mxu0 %vm384_vm2, %v4501_v2 }
  0xdc   : > { %v5245_v53 = vpop.f32.mrf.mxu0  ;;  %4094 = vmatprep.mubr.msk.f32.mxu1 %vm384_vm2, %v6210_v30 }
  0xdd   : > { %v5249_v59 = vpop.f32.mrf.mxu1 }
  0xde   : > { %v5251_v1 = vpop.f32.mrf.mxu0  ;;  %4145 = vmatmul.mubr.msk.f32.gmra.mxu0 %vm384_vm2, %v4504_v6 }
  0xdf   : > { %v5255_v54 = vpop.f32.mrf.mxu1  ;;  %4095 = vmatmul.mubr.msk.f32.gmra.mxu1 %vm384_vm2, %v6211_v24  ;;  %4147 = vmatprep.mubr.msk.f32.mxu0 %vm384_vm2, %v4536_v31 }
  0xe0   : > { %v5261_v2 = vpop.f32.mrf.mxu0  ;;  %4097 = vmatprep.mubr.msk.f32.mxu1 %vm384_vm2, %v6212_v40 }
  0xe1   : > { %v5265_v7 = vpop.f32.mrf.mxu1 }
  0xe2   : > { %v5267_v44 = vpop.f32.mrf.mxu0  ;;  %4148 = vmatmul.mubr.msk.f32.gmra.mxu0 %vm384_vm2, %v4539_v32 }
  0xe3   : > { %v5271_v6 = vpop.f32.mrf.mxu1  ;;  %4098 = vmatmul.mubr.msk.f32.gmra.mxu1 %vm384_vm2, %v6213_v22  ;;  %4150 = vmatprep.mubr.msk.f32.mxu0 %vm384_vm2, %v4580_v11 }
  0xe4   : > { %v5277_v31 = vpop.f32.mrf.mxu0  ;;  %4100 = vmatprep.mubr.msk.f32.mxu1 %vm384_vm2, %v4932_v38 }
  0xe5   : > { %v5281_v18 = vpop.f32.mrf.mxu1 }
  0xe6   : > { %v5283_v3 = vpop.f32.mrf.mxu0  ;;  %4151 = vmatmul.mubr.msk.f32.gmra.mxu0 %vm384_vm2, %v6175_v0  ;;  %v1918_v0 = vrot.slane %v5105_v41, 2 }
  0xe7   : > { %v5287_v32 = vpop.f32.mrf.mxu1  ;;  %4101 = vmatmul.mubr.msk.f32.gmra.mxu1 %vm384_vm2, %v4943_v58  ;;  %4153 = vmatprep.mubr.msk.f32.mxu0 %vm384_vm2, %v4624_v51 }
  0xe8   : > { %6214 = vst [vmem:[#allocation6_spill] sm:$0xff] %v5287_v32  ;;  %v5293_v11 = vpop.f32.mrf.mxu0  ;;  %4103 = vmatprep.mubr.msk.f32.mxu1 %vm384_vm2, %v4949_v56  ;;  %v5335_v32 = vld [vmem:[%s4335_s26 + $0x1a0] sm:$0xff] }
  0xe9   : > { %v5298_v27 = vpop.f32.mrf.mxu1 }
  0xea   : > { %6215 = vst [vmem:[#allocation8_spill] sm:$0xff] %v5298_v27  ;;  %v5301_v62 = vpop.f32.mrf.mxu0  ;;  %4154 = vmatmul.mubr.msk.f32.gmra.mxu0 %vm384_vm2, %v6176_v16  ;;  %v1920_v27 = vrot.slane %v5118_v52, 2  ;;  %v5322_v16 = vsel %vm970_vm3, %v1917_v57, %v1918_v0 }
  0xeb   : > { %v5305_v50 = vpop.f32.mrf.mxu1  ;;  %4104 = vmatmul.mubr.msk.f32.gmra.mxu1 %vm384_vm2, %v4960_v63  ;;  %4156 = vmatprep.mubr.msk.f32.mxu0 %vm384_vm2, %v5102_v29  ;;  %6218 = vst [vmem:[#allocation14_spill] sm:$0xff] %v5322_v16 }
  0xec   : > { %6216 = vst [vmem:[#allocation10_spill] sm:$0xff] %v5305_v50  ;;  %v5311_v51 = vpop.f32.mrf.mxu0  ;;  %4106 = vmatprep.mubr.msk.f32.mxu1 %vm384_vm2, %v4966_v13  ;;  %v5342_v57 = vsel %vm970_vm3, %v1918_v0, %v1920_v27 }
  0xed   : > { %v5319_v43 = vpop.f32.mrf.mxu1  ;;  %6220 = vst [vmem:[#allocation34_spill] sm:$0xff] %v5342_v57 }
  0xee   : > { %6217 = vst [vmem:[#allocation12_spill] sm:$0xff] %v5319_v43  ;;  %v5324_v50 = vpop.f32.mrf.mxu0  ;;  %4157 = vmatmul.mubr.msk.f32.gmra.mxu0 %vm384_vm2, %v5105_v41 }
  0xef   : > { %v5328_v29 = vpop.f32.mrf.mxu1  ;;  %4107 = vmatmul.mubr.msk.f32.gmra.mxu1 %vm384_vm2, %v4975_v15  ;;  %4159 = vmatprep.mubr.msk.f32.mxu0 %vm384_vm2, %v5316_v36 }
  0xf0   : > { %6219 = vst [vmem:[#allocation19_spill] sm:$0xff] %v5328_v29  ;;  %v5337_v52 = vpop.f32.mrf.mxu0  ;;  %4109 = vmatprep.mubr.msk.f32.mxu1 %vm384_vm2, %v5322_v16 }
  0xf1   : > { %v5344_v43 = vpop.f32.mrf.mxu1 }
  0xf2   : > { %6221 = vst [vmem:[#allocation35_spill] sm:$0xff] %v5344_v43  ;;  %v5346_v41 = vpop.f32.mrf.mxu0  ;;  %4160 = vmatmul.mubr.msk.f32.gmra.mxu0 %vm384_vm2, %v5335_v32 }
  0xf3   : > { %v5350_v29 = vpop.f32.mrf.mxu1  ;;  %4110 = vmatmul.mubr.msk.f32.gmra.mxu1 %vm384_vm2, %v5342_v57  ;;  %4214 = vmatprep.mubr.msk.f32.mxu0 %vm384_vm2, %v4739_v4 }
  0xf4   : > { %6222 = vst [vmem:[#allocation36_spill] sm:$0xff] %v5350_v29  ;;  %v5356_v15 = vpop.f32.mrf.mxu0  ;;  %4164 = vmatprep.mubr.msk.f32.mxu1 %vm384_vm2, %v6180_v14 }
  0xf5   : > { %v5360_v27 = vpop.f32.mrf.mxu1 }
  0xf6   : > { %6223 = vst [vmem:[#allocation37_spill] sm:$0xff] %v5360_v27  ;;  %v3916_v0 = vpop.f32.mrf.mxu0  ;;  %4215 = vmatmul.mubr.msk.f32.vlgmr.msra.gmra.mxu0 %vm384_vm2, %v4756_v21 }
  0xf7   : > { %v3866_v43 = vpop.f32.mrf.mxu1  ;;  %4165 = vmatmul.mubr.msk.f32.vlgmr.msra.gmra.mxu1 %vm384_vm2, %v6181_v17  ;;  %4217 = vmatprep.mubr.msk.f32.mxu0 %vm384_vm2, %v4762_v10 }
  0xf8   : > { %v817_v4 = vadd.f32 %v3866_v43, %v5219_v5  ;;  %v1186_v29 = vpop.f32.mrf.mxu0  ;;  %4167 = vmatprep.mubr.msk.f32.mxu1 %vm384_vm2, %v6182_v23  ;;  %v6224_v23 = vld [vmem:[#allocation16_spill] sm:$0xff] }
  0xf9   : > { %v811_v14 = vpop.f32.mrf.mxu1 }
  0xfa   : > { %v5371_v57 = vadd.f32 %v3916_v0, %v817_v4  ;;  %v812_v27 = vadd.f32 %v811_v14, %v5229_v20  ;;  %v3919_v16 = vpop.f32.mrf.mxu0  ;;  %4218 = vmatmul.mubr.msk.f32.gmra.mxu0 %vm384_vm2, %v4773_v60  ;;  %v6226_v14 = vld [vmem:[#allocation24_spill] sm:$0xff] }
  0xfb   : > { %v3869_v21 = vpop.f32.mrf.mxu1  ;;  %4168 = vmatmul.mubr.msk.f32.gmra.mxu1 %vm384_vm2, %v6183_v9  ;;  %4220 = vmatprep.mubr.msk.f32.mxu0 %vm384_vm2, %v4779_v49 }
  0xfc   : > { %v5380_v43 = vadd.f32 %v1186_v29, %v812_v27  ;;  %v827_v10 = vadd.f32 %v3869_v21, %v5235_v61  ;;  %v1196_v17 = vpop.f32.mrf.mxu0  ;;  %4170 = vmatprep.mubr.msk.f32.mxu1 %vm384_vm2, %v6224_v23 }
  0xfd   : > { %v821_v5 = vpop.f32.mrf.mxu1 }
  0xfe   : > { %v5385_v20 = vadd.f32 %v3919_v16, %v827_v10  ;;  %v822_v60 = vadd.f32 %v821_v5, %v5245_v53  ;;  %v3922_v0 = vpop.f32.mrf.mxu0  ;;  %4221 = vmatmul.mubr.msk.f32.gmra.mxu0 %vm384_vm2, %v6203_v33  ;;  %v6225_v16 = vld [vmem:[#allocation21_spill] sm:$0xff]  ;;  %v6227_v10 = vld [vmem:[#allocation26_spill] sm:$0xff] }
  0xff   : > { %v3872_v9 = vpop.f32.mrf.mxu1  ;;  %4171 = vmatmul.mubr.msk.f32.gmra.mxu1 %vm384_vm2, %v6185_v46  ;;  %4223 = vmatprep.mubr.msk.f32.mxu0 %vm384_vm2, %v4796_v12 }
 0x100   : > { %v5394_v49 = vadd.f32 %v1196_v17, %v822_v60  ;;  %v837_v61 = vadd.f32 %v3872_v9, %v5251_v1  ;;  %v1206_v29 = vpop.f32.mrf.mxu0  ;;  %4173 = vmatprep.mubr.msk.f32.mxu1 %vm384_vm2, %v6225_v16  ;;  %v6228_v60 = vld [vmem:[#allocation28_spill] sm:$0xff]  ;;  %v6229_v9 = vld [vmem:[#allocation30_spill] sm:$0xff] }
 0x101   : > { %v831_v53 = vpop.f32.mrf.mxu1 }
 0x102   : > { %v5399_v27 = vadd.f32 %v3922_v0, %v837_v61  ;;  %v832_v33 = vadd.f32 %v831_v53, %v5261_v2  ;;  %v3925_v4 = vpop.f32.mrf.mxu0  ;;  %4224 = vmatmul.mubr.msk.f32.gmra.mxu0 %vm384_vm2, %v6204_v34  ;;  %v6230_v53 = vld [vmem:[#allocation32_spill] sm:$0xff] }
 0x103   : > { %v3875_v46 = vpop.f32.mrf.mxu1  ;;  %4174 = vmatmul.mubr.msk.f32.gmra.mxu1 %vm384_vm2, %v6226_v14  ;;  %4226 = vmatprep.mubr.msk.f32.mxu0 %vm384_vm2, %v4813_v37 }
 0x104   : > { %v5408_v12 = vadd.f32 %v1206_v29, %v832_v33  ;;  %v847_v1 = vadd.f32 %v3875_v46, %v5267_v44  ;;  %v1216_v21 = vpop.f32.mrf.mxu0  ;;  %4176 = vmatprep.mubr.msk.f32.mxu1 %vm384_vm2, %v6227_v10 }
 0x105   : > { %v841_v2 = vpop.f32.mrf.mxu1 }
 0x106   : > { %v5413_v17 = vadd.f32 %v3925_v4, %v847_v1  ;;  %v842_v34 = vadd.f32 %v841_v2, %v5277_v31  ;;  %v3928_v23 = vpop.f32.mrf.mxu0  ;;  %4227 = vmatmul.mubr.msk.f32.gmra.mxu0 %vm384_vm2, %v6205_v47  ;;  %v6231_v4 = vld [vmem:[#allocation2_spill] sm:$0xff]  ;;  %v6233_v2 = vld [vmem:[#allocation5_spill] sm:$0xff] }
 0x107   : > { %v3878_v5 = vpop.f32.mrf.mxu1  ;;  %4177 = vmatmul.mubr.msk.f32.gmra.mxu1 %vm384_vm2, %v6228_v60  ;;  %4229 = vmatprep.mubr.msk.f32.mxu0 %vm384_vm2, %v4830_v28  ;;  %v6234_v60 = vld [vmem:[#allocation7_spill] sm:$0xff] }
 0x108   : > { %v5422_v37 = vadd.f32 %v1216_v21, %v842_v34  ;;  %v857_v44 = vadd.f32 %v3878_v5, %v5283_v3  ;;  %v1226_v0 = vpop.f32.mrf.mxu0  ;;  %4179 = vmatprep.mubr.msk.f32.mxu1 %vm384_vm2, %v6229_v9  ;;  %v6232_v21 = vld [vmem:[#allocation3_spill] sm:$0xff] }
 0x109   : > { %v851_v31 = vpop.f32.mrf.mxu1 }
 0x10a   : > { %v5427_v61 = vadd.f32 %v3928_v23, %v857_v44  ;;  %v852_v47 = vadd.f32 %v851_v31, %v5293_v11  ;;  %v3931_v29 = vpop.f32.mrf.mxu0  ;;  %4230 = vmatmul.mubr.msk.f32.gmra.mxu0 %vm384_vm2, %v6206_v48 }
 0x10b   : > { %v3881_v16 = vpop.f32.mrf.mxu1  ;;  %4180 = vmatmul.mubr.msk.f32.gmra.mxu1 %vm384_vm2, %v6230_v53  ;;  %4232 = vmatprep.mubr.msk.f32.mxu0 %vm384_vm2, %v4847_v45  ;;  %v6237_v53 = vld [vmem:[#allocation13_spill] sm:$0xff] }
 0x10c   : > { %v5436_v28 = vadd.f32 %v1226_v0, %v852_v47  ;;  %v867_v3 = vadd.f32 %v3881_v16, %v5301_v62  ;;  %v1236_v33 = vpop.f32.mrf.mxu0  ;;  %4182 = vmatprep.mubr.msk.f32.mxu1 %vm384_vm2, %v6231_v4  ;;  %v6235_v0 = vld [vmem:[#allocation9_spill] sm:$0xff] }
 0x10d   : > { %v861_v11 = vpop.f32.mrf.mxu1 }
 0x10e   : > { %v5441_v46 = vadd.f32 %v3931_v29, %v867_v3  ;;  %v862_v48 = vadd.f32 %v861_v11, %v5311_v51  ;;  %v3934_v14 = vpop.f32.mrf.mxu0  ;;  %4233 = vmatmul.mubr.msk.f32.gmra.mxu0 %vm384_vm2, %v6207_v55  ;;  %v6236_v29 = vld [vmem:[#allocation11_spill] sm:$0xff] }
 0x10f   : > { %v3884_v1 = vpop.f32.mrf.mxu1  ;;  %4183 = vmatmul.mubr.msk.f32.gmra.mxu1 %vm384_vm2, %v6232_v21  ;;  %4235 = vmatprep.mubr.msk.f32.mxu0 %vm384_vm2, %v4864_v26  ;;  %v6238_v11 = vld [vmem:[#allocation15_spill] sm:$0xff] }
 0x110   : > { %v5450_v62 = vadd.f32 %v1236_v33, %v862_v48  ;;  %v877_v45 = vadd.f32 %v3884_v1, %v5324_v50  ;;  %v1246_v10 = vpop.f32.mrf.mxu0  ;;  %4185 = vmatprep.mubr.msk.f32.mxu1 %vm384_vm2, %v6233_v2 }
 0x111   : > { %v871_v51 = vpop.f32.mrf.mxu1 }
 0x112   : > { %v5455_v34 = vadd.f32 %v3934_v14, %v877_v45  ;;  %v872_v55 = vadd.f32 %v871_v51, %v5337_v52  ;;  %v3937_v23 = vpop.f32.mrf.mxu0  ;;  %4236 = vmatmul.mubr.msk.f32.gmra.mxu0 %vm384_vm2, %v6208_v19  ;;  %v6239_v14 = vld [vmem:[#allocation17_spill] sm:$0xff]  ;;  %v6241_v51 = vld [vmem:[#allocation22_spill] sm:$0xff] }
 0x113   : > { %v3887_v5 = vpop.f32.mrf.mxu1  ;;  %4186 = vmatmul.mubr.msk.f32.gmra.mxu1 %vm384_vm2, %v6234_v60  ;;  %4238 = vmatprep.mubr.msk.f32.mxu0 %vm384_vm2, %v4881_v42  ;;  %v6242_v60 = vld [vmem:[#allocation25_spill] sm:$0xff] }
 0x114   : > { %v5464_v26 = vadd.f32 %v1246_v10, %v872_v55  ;;  %v887_v50 = vadd.f32 %v3887_v5, %v5346_v41  ;;  %v1256_v44 = vpop.f32.mrf.mxu0  ;;  %4188 = vmatprep.mubr.msk.f32.mxu1 %vm384_vm2, %v6235_v0  ;;  %v6240_v10 = vld [vmem:[#allocation20_spill] sm:$0xff] }
 0x115   : > { %v881_v52 = vpop.f32.mrf.mxu1 }
 0x116   : > { %v5469_v9 = vadd.f32 %v3937_v23, %v887_v50  ;;  %v882_v19 = vadd.f32 %v881_v52, %v5356_v15  ;;  %v3940_v31 = vpop.f32.mrf.mxu0  ;;  %4239 = vmatmul.mubr.msk.f32.gmra.mxu0 %vm384_vm2, %v6209_v25 }
 0x117   : > { %v3890_v47 = vpop.f32.mrf.mxu1  ;;  %4189 = vmatmul.mubr.msk.f32.gmra.mxu1 %vm384_vm2, %v6236_v29  ;;  %4241 = vmatprep.mubr.msk.f32.mxu0 %vm384_vm2, %v6210_v30  ;;  %v6245_v29 = vld [vmem:[#allocation6_spill] sm:$0xff] }
 0x118   : > { %v5478_v42 = vadd.f32 %v1256_v44, %v882_v19  ;;  %v897_v41 = vadd.f32 %v3890_v47, %v5223_v8  ;;  %v1266_v16 = vpop.f32.mrf.mxu0  ;;  %4191 = vmatprep.mubr.msk.f32.mxu1 %vm384_vm2, %v6237_v53  ;;  %v6243_v44 = vld [vmem:[#allocation27_spill] sm:$0xff]  ;;  %v2457_v53 = vrot.slane %v5316_v36, 1 }
 0x119   : > { %v891_v15 = vpop.f32.mrf.mxu1 }
 0x11a   : > { %v5483_v3 = vadd.f32 %v3940_v31, %v897_v41  ;;  %v892_v25 = vadd.f32 %v891_v15, %v5233_v35  ;;  %v3943_v33 = vpop.f32.mrf.mxu0  ;;  %4242 = vmatmul.mubr.msk.f32.gmra.mxu0 %vm384_vm2, %v6211_v24  ;;  %v2729_v31 = vrot.slane %v5335_v32, 2  ;;  %v2458_v15 = vrot.slane %v5335_v32, 1  ;;  %v6251_v32 = vld [vmem:[#allocation10_spill] sm:$0xff] }
 0x11b   : > { %v3893_v4 = vpop.f32.mrf.mxu1  ;;  %4192 = vmatmul.mubr.msk.f32.gmra.mxu1 %vm384_vm2, %v6238_v11  ;;  %4244 = vmatprep.mubr.msk.f32.mxu0 %vm384_vm2, %v6212_v40 }
 0x11c   : > { %v5492_v8 = vadd.f32 %v1266_v16, %v892_v25  ;;  %v907_v30 = vadd.f32 %v3893_v4, %v5239_v39  ;;  %v1276_v48 = vpop.f32.mrf.mxu0  ;;  %4194 = vmatprep.mubr.msk.f32.mxu1 %vm384_vm2, %v6239_v14  ;;  %v6246_v16 = vld [vmem:[#allocation31_spill] sm:$0xff]  ;;  %v6249_v14 = vld [vmem:[#allocation33_spill] sm:$0xff] }
 0x11d   : > { %v901_v35 = vpop.f32.mrf.mxu1 }
 0x11e   : > { %v5497_v1 = vadd.f32 %v3943_v33, %v907_v30  ;;  %v902_v24 = vadd.f32 %v901_v35, %v5249_v59  ;;  %v3946_v21 = vpop.f32.mrf.mxu0  ;;  %4245 = vmatmul.mubr.msk.f32.gmra.mxu0 %vm384_vm2, %v6213_v22  ;;  %v6248_v30 = vld [vmem:[#allocation18_spill] sm:$0xff] }
 0x11f   : > { %v3896_v45 = vpop.f32.mrf.mxu1  ;;  %4195 = vmatmul.mubr.msk.f32.gmra.mxu1 %vm384_vm2, %v6240_v10  ;;  %4247 = vmatprep.mubr.msk.f32.mxu0 %vm384_vm2, %v4932_v38  ;;  %v6250_v35 = vld [vmem:[#allocation14_spill] sm:$0xff]  ;;  %v6252_v10 = vld [vmem:[#allocation23_spill] sm:$0xff] }
 0x120   : > { %v5506_v39 = vadd.f32 %v1276_v48, %v902_v24  ;;  %v917_v40 = vadd.f32 %v3896_v45, %v5255_v54  ;;  %v1286_v2 = vpop.f32.mrf.mxu0  ;;  %4197 = vmatprep.mubr.msk.f32.mxu1 %vm384_vm2, %v6241_v51 }
 0x121   : > { %v911_v59 = vpop.f32.mrf.mxu1 }
 0x122   : > { %v5511_v55 = vadd.f32 %v3946_v21, %v917_v40  ;;  %v912_v22 = vadd.f32 %v911_v59, %v5265_v7  ;;  %v3949_v23 = vpop.f32.mrf.mxu0  ;;  %4248 = vmatmul.mubr.msk.f32.gmra.mxu0 %vm384_vm2, %v4943_v58  ;;  %v2459_v59 = vsel %vm301_vm1, %v2457_v53, %v2458_v15 }
 0x123   : > { %v3899_v5 = vpop.f32.mrf.mxu1  ;;  %4198 = vmatmul.mubr.msk.f32.gmra.mxu1 %vm384_vm2, %v6242_v60  ;;  %4250 = vmatprep.mubr.msk.f32.mxu0 %vm384_vm2, %v4949_v56  ;;  %v6244_v56 = vld [vmem:[#allocation29_spill] sm:$0xff] }
 0x124   : > { %v5520_v38 = vadd.f32 %v1286_v2, %v912_v22  ;;  %v927_v54 = vadd.f32 %v3899_v5, %v5271_v6  ;;  %v1296_v50 = vpop.f32.mrf.mxu0  ;;  %4200 = vmatprep.mubr.msk.f32.mxu1 %vm384_vm2, %v6243_v44  ;;  %v2728_v6 = vrot.slane %v5316_v36, 2  ;;  %v6255_v44 = vld [vmem:[#allocation4_spill] sm:$0xff] }
 0x125   : > { %v921_v7 = vpop.f32.mrf.mxu1 }
 0x126   : > { %v5525_v0 = vadd.f32 %v3949_v23, %v927_v54  ;;  %v922_v58 = vadd.f32 %v921_v7, %v5281_v18  ;;  %v3952_v52 = vpop.f32.mrf.mxu0  ;;  %4251 = vmatmul.mubr.msk.f32.gmra.mxu0 %vm384_vm2, %v4960_v63  ;;  %v251_v63 = vld [vmem:[%s4335_s26 + $0x1a8] sm:$0x3]  ;;  %v2730_v40 = vsel %vm970_vm3, %v2728_v6, %v2729_v31  ;;  %v6253_v23 = vld [vmem:[#allocation12_spill] sm:$0xff]  ;;  %v6254_v54 = vld [vmem:[#allocation34_spill] sm:$0xff] }
 0x127   : > { %v3902_v19 = vpop.f32.mrf.mxu1  ;;  %4201 = vmatmul.mubr.msk.f32.gmra.mxu1 %vm384_vm2, %v6244_v56  ;;  %4253 = vmatprep.mubr.msk.f32.mxu0 %vm384_vm2, %v4966_v13  ;;  %v6247_v13 = vld [vmem:[#allocation8_spill] sm:$0xff]  ;;  %v2731_v24 = vrot.slane %v251_v63, 2  ;;  %v2460_v2 = vrot.slane %v251_v63, 1 }
 0x128   : > { %v5536_v47 = vadd.f32 %v1296_v50, %v922_v58  ;;  %v937_v41 = vadd.f32 %v3902_v19, %v6245_v29  ;;  %v1306_v18 = vpop.f32.mrf.mxu0  ;;  %4203 = vmatprep.mubr.msk.f32.mxu1 %vm384_vm2, %v6246_v16 }
 0x129   : > { %v931_v25 = vpop.f32.mrf.mxu1  ;;  %v2732_v7 = vsel %vm970_vm3, %v2729_v31, %v2731_v24  ;;  %v2461_v6 = vsel %vm301_vm1, %v2458_v15, %v2460_v2  ;;  %v6259_v15 = vld [vmem:[#allocation37_spill] sm:$0xff] }
 0x12a   : > { %v5544_v33 = vadd.f32 %v3952_v52, %v937_v41  ;;  %v932_v4 = vadd.f32 %v931_v25, %v6247_v13  ;;  %v3955_v11 = vpop.f32.mrf.mxu0  ;;  %4254 = vmatmul.mubr.msk.f32.gmra.mxu0 %vm384_vm2, %v6248_v30  ;;  %v6256_v52 = vld [vmem:[#allocation19_spill] sm:$0xff]  ;;  %v6258_v25 = vld [vmem:[#allocation36_spill] sm:$0xff] }
 0x12b   : > { %v3905_v48 = vpop.f32.mrf.mxu1  ;;  %4204 = vmatmul.mubr.msk.f32.gmra.mxu1 %vm384_vm2, %v6249_v14  ;;  %4256 = vmatprep.mubr.msk.f32.mxu0 %vm384_vm2, %v6250_v35 }
 0x12c   : > { %v5553_v36 = vadd.f32 %v1306_v18, %v932_v4  ;;  %v947_v21 = vadd.f32 %v3905_v48, %v6251_v32  ;;  %v1316_v45 = vpop.f32.mrf.mxu0  ;;  %4206 = vmatprep.mubr.msk.f32.mxu1 %vm384_vm2, %v6252_v10  ;;  %v6257_v18 = vld [vmem:[#allocation35_spill] sm:$0xff] }
 0x12d   : > { %v941_v51 = vpop.f32.mrf.mxu1 }
 0x12e   : > { %v5560_v22 = vadd.f32 %v3955_v11, %v947_v21  ;;  %v942_v5 = vadd.f32 %v941_v51, %v6253_v23  ;;  %v3958_v60 = vpop.f32.mrf.mxu0  ;;  %4257 = vmatmul.mubr.msk.f32.gmra.mxu0 %vm384_vm2, %v6254_v54 }
 0x12f   : > { %v3908_v50 = vpop.f32.mrf.mxu1  ;;  %4207 = vmatmul.mubr.msk.f32.gmra.mxu1 %vm384_vm2, %v6255_v44  ;;  %4259 = vmatprep.mubr.msk.f32.mxu0 %vm384_vm2, %v2730_v40 }
 0x130   : > { %v5569_v58 = vadd.f32 %v1316_v45, %v942_v5  ;;  %v957_v19 = vadd.f32 %v3908_v50, %v6256_v52  ;;  %v1326_v56 = vpop.f32.mrf.mxu0  ;;  %4209 = vmatprep.mubr.msk.f32.mxu1 %vm384_vm2, %v2459_v59 }
 0x131   : > { %v951_v29 = vpop.f32.mrf.mxu1 }
 0x132   : > { %v5574_v41 = vadd.f32 %v3958_v60, %v957_v19  ;;  %v952_v16 = vadd.f32 %v951_v29, %v6257_v18  ;;  %v3961_v63 = vpop.f32.mrf.mxu0  ;;  %4260 = vmatmul.mubr.msk.f32.gmra.mxu0 %vm384_vm2, %v2732_v7 }
 0x133   : > { %v3911_v53 = vpop.f32.mrf.mxu1  ;;  %4210 = vmatmul.mubr.msk.f32.gmra.mxu1 %vm384_vm2, %v2461_v6 }
 0x134   : > { %v5579_v31 = vadd.f32 %v1326_v56, %v952_v16  ;;  %v967_v13 = vadd.f32 %v3911_v53, %v6258_v25  ;;  %v1336_v4 = vpop.f32.mrf.mxu0 }
 0x135   : > { %v961_v11 = vpop.f32.mrf.mxu1 }
 0x136   : > { %v5582_v30 = vadd.f32 %v3961_v63, %v967_v13  ;;  %v962_v48 = vadd.f32 %v961_v11, %v6259_v15  ;;  %v4016_v14 = vpop.f32.mrf.mxu0 }
 0x137   : > { %v3966_v35 = vpop.f32.mrf.mxu1 }
 0x138   : > { %v5585_v24 = vadd.f32 %v1336_v4, %v962_v48  ;;  %v1614_v32 = vadd.f32 %v3966_v35, %v5371_v57  ;;  %v1726_v21 = vpop.f32.mrf.mxu0 }
 0x139   : > { %v1454_v45 = vpop.f32.mrf.mxu1 }
 0x13a   : > { %v5588_v10 = vadd.f32 %v4016_v14, %v1614_v32  ;;  %v1613_v40 = vadd.f32 %v1454_v45, %v5380_v43  ;;  %v4019_v2 = vpop.f32.mrf.mxu0 }
 0x13b   : > { %v3969_v51 = vpop.f32.mrf.mxu1 }
 0x13c   : > { %v5591_v59 = vadd.f32 %v1726_v21, %v1613_v40  ;;  %v1616_v23 = vadd.f32 %v3969_v51, %v5385_v20  ;;  %v1736_v5 = vpop.f32.mrf.mxu0 }
 0x13d   : > { %v1464_v60 = vpop.f32.mrf.mxu1 }
 0x13e   : > { %v5594_v54 = vadd.f32 %v4019_v2, %v1616_v23  ;;  %v1615_v50 = vadd.f32 %v1464_v60, %v5394_v49  ;;  %v4022_v44 = vpop.f32.mrf.mxu0 }
 0x13f   : > { %v3972_v57 = vpop.f32.mrf.mxu1 }
 0x140   : > { %v5597_v7 = vadd.f32 %v1736_v5, %v1615_v50  ;;  %v1618_v52 = vadd.f32 %v3972_v57, %v5399_v27  ;;  %v1746_v19 = vpop.f32.mrf.mxu0 }
 0x141   : > { %v1474_v43 = vpop.f32.mrf.mxu1 }
 0x142   : > { %v5600_v56 = vadd.f32 %v4022_v44, %v1618_v52  ;;  %v1617_v6 = vadd.f32 %v1474_v43, %v5408_v12  ;;  %v4025_v29 = vpop.f32.mrf.mxu0 }
 0x143   : > { %v3975_v20 = vpop.f32.mrf.mxu1 }
 0x144   : > { %v5603_v18 = vadd.f32 %v1746_v19, %v1617_v6  ;;  %v1620_v16 = vadd.f32 %v3975_v20, %v5413_v17  ;;  %v1756_v63 = vpop.f32.mrf.mxu0 }
 0x145   : > { %v1484_v49 = vpop.f32.mrf.mxu1 }
 0x146   : > { %v5606_v53 = vadd.f32 %v4025_v29, %v1620_v16  ;;  %v1619_v25 = vadd.f32 %v1484_v49, %v5422_v37  ;;  %v4028_v13 = vpop.f32.mrf.mxu0 }
 0x147   : > { %v3978_v27 = vpop.f32.mrf.mxu1 }
 0x148   : > { %v5609_v4 = vadd.f32 %v1756_v63, %v1619_v25  ;;  %v1622_v11 = vadd.f32 %v3978_v27, %v5427_v61  ;;  %v1766_v15 = vpop.f32.mrf.mxu0 }
 0x149   : > { %v1494_v12 = vpop.f32.mrf.mxu1 }
 0x14a   : > { %v5612_v48 = vadd.f32 %v4028_v13, %v1622_v11  ;;  %v1621_v14 = vadd.f32 %v1494_v12, %v5436_v28  ;;  %v4031_v35 = vpop.f32.mrf.mxu0 }
 0x14b   : > { %v3981_v17 = vpop.f32.mrf.mxu1 }
 0x14c   : > { %v5615_v32 = vadd.f32 %v1766_v15, %v1621_v14  ;;  %v1624_v21 = vadd.f32 %v3981_v17, %v5441_v46  ;;  %v1776_v45 = vpop.f32.mrf.mxu0 }
 0x14d   : > { %v1504_v37 = vpop.f32.mrf.mxu1 }
 0x14e   : > { %v5618_v40 = vadd.f32 %v4031_v35, %v1624_v21  ;;  %v1623_v2 = vadd.f32 %v1504_v37, %v5450_v62  ;;  %v4034_v51 = vpop.f32.mrf.mxu0 }
 0x14f   : > { %v3984_v61 = vpop.f32.mrf.mxu1 }
 0x150   : > { %v5621_v23 = vadd.f32 %v1776_v45, %v1623_v2  ;;  %v1626_v5 = vadd.f32 %v3984_v61, %v5455_v34  ;;  %v1786_v60 = vpop.f32.mrf.mxu0 }
 0x151   : > { %v1514_v28 = vpop.f32.mrf.mxu1 }
 0x152   : > { %v5624_v50 = vadd.f32 %v4034_v51, %v1626_v5  ;;  %v1625_v44 = vadd.f32 %v1514_v28, %v5464_v26  ;;  %v4037_v57 = vpop.f32.mrf.mxu0 }
 0x153   : > { %v3987_v46 = vpop.f32.mrf.mxu1 }
 0x154   : > { %v5627_v52 = vadd.f32 %v1786_v60, %v1625_v44  ;;  %v1628_v19 = vadd.f32 %v3987_v46, %v5469_v9  ;;  %v1796_v43 = vpop.f32.mrf.mxu0 }
 0x155   : > { %v1524_v62 = vpop.f32.mrf.mxu1 }
 0x156   : > { %v5630_v6 = vadd.f32 %v4037_v57, %v1628_v19  ;;  %v1627_v29 = vadd.f32 %v1524_v62, %v5478_v42  ;;  %v4040_v20 = vpop.f32.mrf.mxu0 }
 0x157   : > { %v3990_v34 = vpop.f32.mrf.mxu1 }
 0x158   : > { %v5633_v16 = vadd.f32 %v1796_v43, %v1627_v29  ;;  %v1630_v63 = vadd.f32 %v3990_v34, %v5483_v3  ;;  %v1806_v49 = vpop.f32.mrf.mxu0 }
 0x159   : > { %v1534_v26 = vpop.f32.mrf.mxu1 }
 0x15a   : > { %v5636_v25 = vadd.f32 %v4040_v20, %v1630_v63  ;;  %v1629_v13 = vadd.f32 %v1534_v26, %v5492_v8  ;;  %v4043_v27 = vpop.f32.mrf.mxu0 }
 0x15b   : > { %v3993_v9 = vpop.f32.mrf.mxu1 }
 0x15c   : > { %v5639_v11 = vadd.f32 %v1806_v49, %v1629_v13  ;;  %v1632_v15 = vadd.f32 %v3993_v9, %v5497_v1  ;;  %v1816_v12 = vpop.f32.mrf.mxu0 }
 0x15d   : > { %v1544_v42 = vpop.f32.mrf.mxu1 }
 0x15e   : > { %v5642_v14 = vadd.f32 %v4043_v27, %v1632_v15  ;;  %v1631_v35 = vadd.f32 %v1544_v42, %v5506_v39  ;;  %v4046_v17 = vpop.f32.mrf.mxu0 }
 0x15f   : > { %v3996_v3 = vpop.f32.mrf.mxu1 }
 0x160   : > { %6260 = vst [vmem:[#allocation38_spill] sm:$0xff] %v5642_v14  ;;  %v5645_v21 = vadd.f32 %v1816_v12, %v1631_v35  ;;  %v1634_v45 = vadd.f32 %v3996_v3, %v5511_v55  ;;  %v1826_v37 = vpop.f32.mrf.mxu0 }
 0x161   : > { %v1554_v8 = vpop.f32.mrf.mxu1 }
 0x162   : > { %6261 = vst [vmem:[#allocation39_spill] sm:$0xff] %v5645_v21  ;;  %v5648_v2 = vadd.f32 %v4046_v17, %v1634_v45  ;;  %v1633_v51 = vadd.f32 %v1554_v8, %v5520_v38  ;;  %v4049_v61 = vpop.f32.mrf.mxu0 }
 0x163   : > { %v3999_v1 = vpop.f32.mrf.mxu1 }
 0x164   : > { %6262 = vst [vmem:[#allocation40_spill] sm:$0xff] %v5648_v2  ;;  %v5651_v5 = vadd.f32 %v1826_v37, %v1633_v51  ;;  %v1636_v60 = vadd.f32 %v3999_v1, %v5525_v0  ;;  %v1836_v28 = vpop.f32.mrf.mxu0 }
 0x165   : > { %v1564_v39 = vpop.f32.mrf.mxu1 }
 0x166   : > { %6263 = vst [vmem:[#allocation41_spill] sm:$0xff] %v5651_v5  ;;  %v5654_v44 = vadd.f32 %v4049_v61, %v1636_v60  ;;  %v1635_v57 = vadd.f32 %v1564_v39, %v5536_v47  ;;  %v4052_v46 = vpop.f32.mrf.mxu0 }
 0x167   : > { %v4002_v55 = vpop.f32.mrf.mxu1 }
 0x168   : > { %6264 = vst [vmem:[#allocation42_spill] sm:$0xff] %v5654_v44  ;;  %v5657_v19 = vadd.f32 %v1836_v28, %v1635_v57  ;;  %v1638_v43 = vadd.f32 %v4002_v55, %v5544_v33  ;;  %v1846_v62 = vpop.f32.mrf.mxu0 }
 0x169   : > { %v1574_v38 = vpop.f32.mrf.mxu1 }
 0x16a   : > { %6265 = vst [vmem:[#allocation43_spill] sm:$0xff] %v5657_v19  ;;  %v5660_v29 = vadd.f32 %v4052_v46, %v1638_v43  ;;  %v1637_v20 = vadd.f32 %v1574_v38, %v5553_v36  ;;  %v4055_v34 = vpop.f32.mrf.mxu0 }
 0x16b   : > { %v4005_v0 = vpop.f32.mrf.mxu1 }
 0x16c   : > { %6266 = vst [vmem:[#allocation44_spill] sm:$0xff] %v5660_v29  ;;  %v5663_v63 = vadd.f32 %v1846_v62, %v1637_v20  ;;  %v1640_v49 = vadd.f32 %v4005_v0, %v5560_v22  ;;  %v1856_v26 = vpop.f32.mrf.mxu0 }
 0x16d   : > { %v1584_v47 = vpop.f32.mrf.mxu1 }
 0x16e   : > { %6267 = vst [vmem:[#allocation16_spill] sm:$0xff] %v5663_v63  ;;  %v5666_v13 = vadd.f32 %v4055_v34, %v1640_v49  ;;  %v1639_v27 = vadd.f32 %v1584_v47, %v5569_v58  ;;  %v4058_v9 = vpop.f32.mrf.mxu0 }
 0x16f   : > { %v4008_v33 = vpop.f32.mrf.mxu1 }
 0x170   : > { %6268 = vst [vmem:[#allocation21_spill] sm:$0xff] %v5666_v13  ;;  %v5669_v15 = vadd.f32 %v1856_v26, %v1639_v27  ;;  %v1642_v12 = vadd.f32 %v4008_v33, %v5574_v41  ;;  %v1866_v42 = vpop.f32.mrf.mxu0 }
 0x171   : > { %v1594_v36 = vpop.f32.mrf.mxu1 }
 0x172   : > { %6269 = vst [vmem:[#allocation24_spill] sm:$0xff] %v5669_v15  ;;  %v5672_v35 = vadd.f32 %v4058_v9, %v1642_v12  ;;  %v1641_v17 = vadd.f32 %v1594_v36, %v5579_v31  ;;  %v4061_v3 = vpop.f32.mrf.mxu0 }
 0x173   : > { %v4011_v22 = vpop.f32.mrf.mxu1 }
 0x174   : > { %6270 = vst [vmem:[#allocation26_spill] sm:$0xff] %v5672_v35  ;;  %v5675_v45 = vadd.f32 %v1866_v42, %v1641_v17  ;;  %v1644_v37 = vadd.f32 %v4011_v22, %v5582_v30  ;;  %v1876_v8 = vpop.f32.mrf.mxu0 }
 0x175   : > { %v1604_v58 = vpop.f32.mrf.mxu1 }
 0x176   : > { %6271 = vst [vmem:[#allocation28_spill] sm:$0xff] %v5675_v45  ;;  %v5678_v51 = vadd.f32 %v4061_v3, %v1644_v37  ;;  %v1643_v61 = vadd.f32 %v1604_v58, %v5585_v24  ;;  %v5681_v1 = vpop.f32.mrf.mxu0 }
 0x177   : > { %v4066_v41 = vpop.f32.mrf.mxu1 }
 0x178   : > { %6272 = vst [vmem:[#allocation30_spill] sm:$0xff] %v5678_v51  ;;  %v5683_v60 = vadd.f32 %v1876_v8, %v1643_v61  ;;  %v5685_v28 = vpop.f32.mrf.mxu0 }
 0x179   : > { %v1997_v31 = vpop.f32.mrf.mxu1 }
 0x17a   : > { %6273 = vst [vmem:[#allocation32_spill] sm:$0xff] %v5683_v60  ;;  %v5687_v39 = vpop.f32.mrf.mxu0 }
 0x17b   : > { %v4069_v57 = vpop.f32.mrf.mxu1 }
 0x17c   : > { %v5689_v46 = vpop.f32.mrf.mxu0 }
 0x17d   : > { %v5691_v30 = vpop.f32.mrf.mxu1 }
 0x17e   : > { %v5693_v55 = vpop.f32.mrf.mxu0 }
 0x17f   : > { %v5695_v43 = vpop.f32.mrf.mxu1 }
 0x180   : > { %v5697_v24 = vpop.f32.mrf.mxu0 }
 0x181   : > { %v5699_v62 = vpop.f32.mrf.mxu1 }
 0x182   : > { %v5701_v38 = vpop.f32.mrf.mxu0 }
 0x183   : > { %v5703_v20 = vpop.f32.mrf.mxu1 }
 0x184   : > { %v5705_v34 = vpop.f32.mrf.mxu0 }
 0x185   : > { %v5707_v0 = vpop.f32.mrf.mxu1 }
 0x186   : > { %v5709_v49 = vpop.f32.mrf.mxu0 }
 0x187   : > { %v5711_v26 = vpop.f32.mrf.mxu1 }
 0x188   : > { %v5713_v47 = vpop.f32.mrf.mxu0 }
 0x189   : > { %v5715_v27 = vpop.f32.mrf.mxu1 }
 0x18a   : > { %v5717_v9 = vpop.f32.mrf.mxu0 }
 0x18b   : > { %v5719_v33 = vpop.f32.mrf.mxu1 }
 0x18c   : > { %v5721_v12 = vpop.f32.mrf.mxu0 }
 0x18d   : > { %v5723_v42 = vpop.f32.mrf.mxu1 }
 0x18e   : > { %v5725_v36 = vpop.f32.mrf.mxu0 }
 0x18f   : > { %v5727_v17 = vpop.f32.mrf.mxu1 }
 0x190   : > { %v5729_v3 = vpop.f32.mrf.mxu0 }
 0x191   : > { %v5731_v22 = vpop.f32.mrf.mxu1 }
 0x192   : > { %v5733_v37 = vpop.f32.mrf.mxu0 }
 0x193   : > { %v5735_v8 = vpop.f32.mrf.mxu1 }
 0x194   : > { %v5737_v58 = vpop.f32.mrf.mxu0 }
 0x195   : > { %v5739_v61 = vpop.f32.mrf.mxu1 }
 0x196   : > { %v5741_v60 = vpop.f32.mrf.mxu0 }
 0x197   : > { %v5743_v51 = vpop.f32.mrf.mxu1 }
 0x198   : > { %v5745_v45 = vpop.f32.mrf.mxu0 }
 0x199   : > { %6274 = vst [vmem:[#allocation2_spill] sm:$0xff] %v5745_v45  ;;  %v5747_v35 = vpop.f32.mrf.mxu1 }
 0x19a   : > { %v5749_v15 = vpop.f32.mrf.mxu0 }
 0x19b   : > { %6275 = vst [vmem:[#allocation3_spill] sm:$0xff] %v5749_v15  ;;  %v5751_v13 = vpop.f32.mrf.mxu1 }
 0x19c   : > { %6276 = vst [vmem:[#allocation5_spill] sm:$0xff] %v5751_v13  ;;  %v5753_v63 = vpop.f32.mrf.mxu0 }
 0x19d   : > { %6277 = vst [vmem:[#allocation7_spill] sm:$0xff] %v5753_v63  ;;  %v5755_v29 = vpop.f32.mrf.mxu1 }
 0x19e   : > { %6278 = vst [vmem:[#allocation9_spill] sm:$0xff] %v5755_v29  ;;  %v5757_v19 = vpop.f32.mrf.mxu0 }
 0x19f   : > { %6279 = vst [vmem:[#allocation11_spill] sm:$0xff] %v5757_v19  ;;  %v5759_v44 = vpop.f32.mrf.mxu1 }
 0x1a0   : > { %6280 = vst [vmem:[#allocation13_spill] sm:$0xff] %v5759_v44  ;;  %v5761_v5 = vpop.f32.mrf.mxu0 }
 0x1a1   : > { %6281 = vst [vmem:[#allocation15_spill] sm:$0xff] %v5761_v5  ;;  %v5763_v2 = vpop.f32.mrf.mxu1 }
 0x1a2   : > { %6282 = vst [vmem:[#allocation17_spill] sm:$0xff] %v5763_v2  ;;  %v5765_v21 = vpop.f32.mrf.mxu0 }
 0x1a3   : > { %6283 = vst [vmem:[#allocation20_spill] sm:$0xff] %v5765_v21  ;;  %v5767_v45 = vpop.f32.mrf.mxu1 }
 0x1a4   : > { %6284 = vst [vmem:[#allocation22_spill] sm:$0xff] %v5767_v45  ;;  %v5769_v14 = vpop.f32.mrf.mxu0 }
 0x1a5   : > { %6285 = vst [vmem:[#allocation25_spill] sm:$0xff] %v5769_v14  ;;  %v5771_v15 = vpop.f32.mrf.mxu1 }
 0x1a6   : > { %6286 = vst [vmem:[#allocation27_spill] sm:$0xff] %v5771_v15  ;;  %v5773_v13 = vpop.f32.mrf.mxu0 }
 0x1a7   : > { %6287 = vst [vmem:[#allocation29_spill] sm:$0xff] %v5773_v13  ;;  %v5775_v63 = vpop.f32.mrf.mxu1 }
 0x1a8   : > { %6288 = vst [vmem:[#allocation6_spill] sm:$0xff] %v5775_v63  ;;  %v5777_v29 = vpop.f32.mrf.mxu0 }
 0x1a9   : > { %6289 = vst [vmem:[#allocation31_spill] sm:$0xff] %v5777_v29  ;;  %v5779_v19 = vpop.f32.mrf.mxu1  ;;  %v2157_v29 = vadd.f32 %v4066_v41, %v5588_v10  ;;  %v2158_v10 = vadd.f32 %v5691_v30, %v5597_v7  ;;  %v5825_v7 = vld [vmem:[%s6048_s3] ss:$0 sm:$0xff] }
 0x1aa   : > { %6290 = vst [vmem:[#allocation8_spill] sm:$0xff] %v5779_v19  ;;  %v5781_v44 = vpop.f32.mrf.mxu0 }
 0x1ab   : > { %6291 = vst [vmem:[#allocation18_spill] sm:$0xff] %v5781_v44  ;;  %v5783_v5 = vpop.f32.mrf.mxu1  ;;  %v2156_v44 = vadd.f32 %v1997_v31, %v5591_v59  ;;  %v5815_v59 = vld [vmem:[%s6047_s2] ss:$0 sm:$0xff] }
 0x1ac   : > { %6292 = vst [vmem:[#allocation33_spill] sm:$0xff] %v5783_v5  ;;  %v5785_v2 = vpop.f32.mrf.mxu0 }
 0x1ad   : > { %6293 = vst [vmem:[#allocation14_spill] sm:$0xff] %v5785_v2  ;;  %v5787_v21 = vpop.f32.mrf.mxu1 }
 0x1ae   : > { %6294 = vst [vmem:[#allocation10_spill] sm:$0xff] %v5787_v21  ;;  %v5789_v45 = vpop.f32.mrf.mxu0 }
 0x1af   : > { %6295 = vst [vmem:[#allocation23_spill] sm:$0xff] %v5789_v45  ;;  %v5791_v14 = vpop.f32.mrf.mxu1  ;;  %v2425_v45 = vadd.f32 %v5681_v1, %v2157_v29 }
 0x1b0   : > { %6296 = vst [vmem:[#allocation12_spill] sm:$0xff] %v5791_v14  ;;  %v5793_v15 = vpop.f32.mrf.mxu0  ;;  %v2159_v14 = vadd.f32 %v4069_v57, %v5594_v54 }
 0x1b1   : > { %6297 = vst [vmem:[#allocation34_spill] sm:$0xff] %v5793_v15  ;;  %v5795_v13 = vpop.f32.mrf.mxu1 }
 0x1b2   : > { %6298 = vst [vmem:[#allocation4_spill] sm:$0xff] %v5795_v13  ;;  %v5798_v63 = vpop.f32.mrf.mxu0  ;;  %v2424_v13 = vadd.f32 %v5685_v28, %v2156_v44  ;;  %v2427_v29 = vadd.f32 %v5687_v39, %v2159_v14  ;;  %v2160_v44 = vadd.f32 %v5699_v62, %v5603_v18 }
 0x1b3   : > { %6299 = vst [vmem:[#allocation19_spill] sm:$0xff] %v5798_v63  ;;  %v5800_v19 = vpop.f32.mrf.mxu1 }
 0x1b4   : > { %v5803_v5 = vpop.f32.mrf.mxu0 }
 0x1b5   : > { %6300 = vst [vmem:[#allocation35_spill] sm:$0xff] %v5803_v5  ;;  %v5805_v2 = vpop.f32.mrf.mxu1  ;;  %v2161_v5 = vadd.f32 %v5695_v43, %v5600_v56  ;;  %v2163_v56 = vadd.f32 %v5703_v20, %v5606_v53 }
 0x1b6   : > { %v4216_v21 = vpop.f32.mrf.mxu0 }
 0x1b7   : > { %v4166_v15 = vpop.f32.mrf.mxu1 }
 0x1b8   : > { %v2697_v41 = vadd.f32 %v4166_v15, %v2425_v45  ;;  %v2808_v63 = vpop.f32.mrf.mxu0  ;;  %v2426_v45 = vadd.f32 %v5689_v46, %v2158_v10  ;;  %v2428_v46 = vadd.f32 %v5697_v24, %v2160_v44  ;;  %v2431_v24 = vadd.f32 %v5701_v38, %v2163_v56 }
 0x1b9   : > { %v2537_v31 = vpop.f32.mrf.mxu1 }
 0x1ba   : > { %v2968_v1 = vadd.f32 %v4216_v21, %v2697_v41  ;;  %v2696_v54 = vadd.f32 %v2537_v31, %v2424_v13  ;;  %v4219_v57 = vpop.f32.mrf.mxu0  ;;  %v2429_v31 = vadd.f32 %v5693_v55, %v2161_v5 }
 0x1bb   : > { %v4169_v15 = vpop.f32.mrf.mxu1 }
 0x1bc   : > { %v3007_v14 = vmul.f32 %v5815_v59, %v2968_v1  ;;  %v2967_v21 = vadd.f32 %v2808_v63, %v2696_v54  ;;  %v2699_v13 = vadd.f32 %v4169_v15, %v2427_v29  ;;  %v2818_v28 = vpop.f32.mrf.mxu0  ;;  %v2162_v63 = vadd.f32 %v5707_v0, %v5609_v4 }
 0x1bd   : > { %v2547_v39 = vpop.f32.mrf.mxu1  ;;  %v2165_v4 = vadd.f32 %v5711_v26, %v5612_v48 }
 0x1be   : > { %v3046_v18 = vadd.f32 %v5825_v7, %v3007_v14  ;;  %v3006_v30 = vmul.f32 %v5815_v59, %v2967_v21  ;;  %v2970_v43 = vadd.f32 %v4219_v57, %v2699_v13  ;;  %v2698_v62 = vadd.f32 %v2547_v39, %v2426_v45  ;;  %v4222_v41 = vpop.f32.mrf.mxu0 }
 0x1bf   : > { %v4172_v53 = vpop.f32.mrf.mxu1  ;;  %v2430_v14 = vadd.f32 %v5705_v34, %v2162_v63  ;;  %v2433_v39 = vadd.f32 %v5709_v49, %v2165_v4  ;;  %v2166_v49 = vadd.f32 %v5723_v42, %v5621_v23  ;;  %v2169_v23 = vadd.f32 %v5727_v17, %v5624_v50 }
 0x1c0   : > { %v3078_v20 = vmax.f32 %v3046_v18, 0.0  ;;  %v3045_v10 = vadd.f32 %v5825_v7, %v3006_v30  ;;  %v3009_v29 = vmul.f32 %v5815_v59, %v2970_v43  ;;  %v2969_v5 = vadd.f32 %v2818_v28, %v2698_v62  ;;  %v2828_v55 = vpop.f32.mrf.mxu0 }
 0x1c1   : > { %v2701_v0 = vadd.f32 %v4172_v53, %v2429_v31  ;;  %v2557_v1 = vpop.f32.mrf.mxu1  ;;  %v2164_v18 = vadd.f32 %v5715_v27, %v5615_v32  ;;  %v2167_v30 = vadd.f32 %v5719_v33, %v5618_v40 }
 0x1c2   : > { %3111 = vst.msk [vmem:[%s5841_s21 + $0x8] sm:$0xff] %vm3109_vm4, %v3078_v20  ;;  %v3077_v54 = vmax.f32 %v3045_v10, 0.0  ;;  %v3048_v57 = vadd.f32 %v5825_v7, %v3009_v29  ;;  %v3008_v44 = vmul.f32 %v5815_v59, %v2969_v5  ;;  %v2700_v15 = vadd.f32 %v2557_v1, %v2428_v46  ;;  %v4225_v45 = vpop.f32.mrf.mxu0 }
 0x1c3   : > { %v2972_v21 = vadd.f32 %v4222_v41, %v2701_v0  ;;  %v4175_v13 = vpop.f32.mrf.mxu1  ;;  %v2432_v29 = vadd.f32 %v5713_v47, %v2164_v18  ;;  %v2435_v5 = vadd.f32 %v5717_v9, %v2167_v30  ;;  %v2168_v47 = vadd.f32 %v5731_v22, %v5627_v52 }
 0x1c4   : > { %3110 = vst.msk [vmem:[%s5841_s21] sm:$0xff] %vm3109_vm4, %v3077_v54  ;;  %v3080_v38 = vmax.f32 %v3048_v57, 0.0  ;;  %v3047_v48 = vadd.f32 %v5825_v7, %v3008_v44  ;;  %v2971_v26 = vadd.f32 %v2828_v55, %v2700_v15  ;;  %v2703_v28 = vadd.f32 %v4175_v13, %v2431_v24  ;;  %v2838_v56 = vpop.f32.mrf.mxu0 }
 0x1c5   : > { %v3011_v34 = vmul.f32 %v5815_v59, %v2972_v21  ;;  %v2567_v43 = vpop.f32.mrf.mxu1  ;;  %v2434_v57 = vadd.f32 %v5721_v12, %v2166_v49  ;;  %v2437_v21 = vadd.f32 %v5725_v36, %v2169_v23  ;;  %v6302_v23 = vld [vmem:[#allocation5_spill] sm:$0xff] }
 0x1c6   : > { %3113 = vst.msk [vmem:[%s5841_s21 + $0x18] sm:$0xff] %vm3109_vm4, %v3080_v38  ;;  %v3079_v62 = vmax.f32 %v3047_v48, 0.0  ;;  %v3010_v41 = vmul.f32 %v5815_v59, %v2971_v26  ;;  %v2974_v31 = vadd.f32 %v4225_v45, %v2703_v28  ;;  %v2702_v46 = vadd.f32 %v2567_v43, %v2430_v14  ;;  %v4228_v63 = vpop.f32.mrf.mxu0 }
 0x1c7   : > { %v3050_v53 = vadd.f32 %v5825_v7, %v3011_v34  ;;  %v4178_v32 = vpop.f32.mrf.mxu1  ;;  %v2436_v28 = vadd.f32 %v5729_v3, %v2168_v47  ;;  %v2173_v3 = vadd.f32 %v5743_v51, %v5636_v25  ;;  %v2172_v25 = vadd.f32 %v5747_v35, %v5639_v11 }
 0x1c8   : > { %3112 = vst.msk [vmem:[%s5841_s21 + $0x10] sm:$0xff] %vm3109_vm4, %v3079_v62  ;;  %v3049_v40 = vadd.f32 %v5825_v7, %v3010_v41  ;;  %v3013_v27 = vmul.f32 %v5815_v59, %v2974_v31  ;;  %v2973_v33 = vadd.f32 %v2838_v56, %v2702_v46  ;;  %v2705_v20 = vadd.f32 %v4178_v32, %v2433_v39  ;;  %v2848_v10 = vpop.f32.mrf.mxu0 }
 0x1c9   : > { %v3082_v42 = vmax.f32 %v3050_v53, 0.0  ;;  %v2577_v55 = vpop.f32.mrf.mxu1  ;;  %v2171_v56 = vadd.f32 %v5735_v8, %v5630_v6  ;;  %v2170_v39 = vadd.f32 %v5739_v61, %v5633_v16 }
 0x1ca   : > { %v3081_v24 = vmax.f32 %v3049_v40, 0.0  ;;  %v3052_v4 = vadd.f32 %v5825_v7, %v3013_v27  ;;  %v3012_v0 = vmul.f32 %v5815_v59, %v2973_v33  ;;  %v2976_v1 = vadd.f32 %v4228_v63, %v2705_v20  ;;  %v4231_v54 = vpop.f32.mrf.mxu0 }
 0x1cb   : > { %3115 = vst.msk [vmem:[%s5841_s21 + $0x28] sm:$0xff] %vm3109_vm4, %v3082_v42  ;;  %v2704_v9 = vadd.f32 %v2577_v55, %v2432_v29  ;;  %v4181_v44 = vpop.f32.mrf.mxu1  ;;  %v2439_v49 = vadd.f32 %v5733_v37, %v2171_v56  ;;  %v2438_v53 = vadd.f32 %v5737_v58, %v2170_v39  ;;  %v2441_v29 = vadd.f32 %v5741_v60, %v2173_v3 }
 0x1cc   : > { %3114 = vst.msk [vmem:[%s5841_s21 + $0x20] sm:$0xff] %vm3109_vm4, %v3081_v24  ;;  %v3084_v50 = vmax.f32 %v3052_v4, 0.0  ;;  %v3051_v17 = vadd.f32 %v5825_v7, %v3012_v0  ;;  %v3015_v15 = vmul.f32 %v5815_v59, %v2976_v1  ;;  %v2707_v45 = vadd.f32 %v4181_v44, %v2435_v5  ;;  %v2858_v14 = vpop.f32.mrf.mxu0  ;;  %v6301_v5 = vld [vmem:[#allocation38_spill] sm:$0xff] }
 0x1cd   : > { %v2975_v12 = vadd.f32 %v2848_v10, %v2704_v9  ;;  %v2587_v13 = vpop.f32.mrf.mxu1  ;;  %v2175_v37 = vadd.f32 %v6302_v23, %v6301_v5  ;;  %v6303_v0 = vld [vmem:[#allocation2_spill] sm:$0xff]  ;;  %v6316_v5 = vld [vmem:[#allocation43_spill] sm:$0xff] }
 0x1ce   : > { %3117 = vst.msk [vmem:[%s5841_s21 + $0x38] sm:$0xff] %vm3109_vm4, %v3084_v50  ;;  %v3083_v52 = vmax.f32 %v3051_v17, 0.0  ;;  %v3054_v22 = vadd.f32 %v5825_v7, %v3015_v15  ;;  %v2978_v38 = vadd.f32 %v4231_v54, %v2707_v45  ;;  %v2706_v48 = vadd.f32 %v2587_v13, %v2434_v57  ;;  %v4234_v26 = vpop.f32.mrf.mxu0  ;;  %v6304_v17 = vld [vmem:[#allocation3_spill] sm:$0xff]  ;;  %v6308_v13 = vld [vmem:[#allocation13_spill] sm:$0xff] }
 0x1cf   : > { %v3014_v36 = vmul.f32 %v5815_v59, %v2975_v12  ;;  %v4184_v18 = vpop.f32.mrf.mxu1  ;;  %v2440_v1 = vadd.f32 %v6303_v0, %v2172_v25  ;;  %v2443_v15 = vadd.f32 %v6304_v17, %v2175_v37  ;;  %v6305_v45 = vld [vmem:[#allocation39_spill] sm:$0xff]  ;;  %v6307_v12 = vld [vmem:[#allocation40_spill] sm:$0xff]  ;;  %v6319_v17 = vld [vmem:[#allocation25_spill] sm:$0xff] }
 0x1d0   : > { %3116 = vst.msk [vmem:[%s5841_s21 + $0x30] sm:$0xff] %vm3109_vm4, %v3083_v52  ;;  %v3086_v30 = vmax.f32 %v3054_v22, 0.0  ;;  %v3017_v34 = vmul.f32 %v5815_v59, %v2978_v38  ;;  %v2977_v43 = vadd.f32 %v2858_v14, %v2706_v48  ;;  %v2709_v62 = vadd.f32 %v4184_v18, %v2437_v21  ;;  %v2868_v41 = vpop.f32.mrf.mxu0  ;;  %v6306_v14 = vld [vmem:[#allocation9_spill] sm:$0xff]  ;;  %v6317_v23 = vld [vmem:[#allocation27_spill] sm:$0xff]  ;;  %v6318_v0 = vld [vmem:[#allocation20_spill] sm:$0xff] }
 0x1d1   : > { %v3053_v31 = vadd.f32 %v5825_v7, %v3014_v36  ;;  %v2597_v6 = vpop.f32.mrf.mxu1  ;;  %v2174_v21 = vadd.f32 %v6306_v14, %v6305_v45  ;;  %v2177_v52 = vadd.f32 %v6308_v13, %v6307_v12  ;;  %v6309_v36 = vld [vmem:[#allocation41_spill] sm:$0xff]  ;;  %v2178_v37 = vadd.f32 %v6317_v23, %v6316_v5  ;;  %v6320_v45 = vld [vmem:[#allocation44_spill] sm:$0xff]  ;;  %v6321_v14 = vld [vmem:[#allocation6_spill] sm:$0xff] }
 0x1d2   : > { %3119 = vst.msk [vmem:[%s5841_s21 + $0x48] sm:$0xff] %vm3109_vm4, %v3086_v30  ;;  %v3056_v16 = vadd.f32 %v5825_v7, %v3017_v34  ;;  %v3016_v8 = vmul.f32 %v5815_v59, %v2977_v43  ;;  %v2980_v61 = vadd.f32 %v4234_v26, %v2709_v62  ;;  %v2708_v46 = vadd.f32 %v2597_v6, %v2436_v28  ;;  %v4237_v63 = vpop.f32.mrf.mxu0  ;;  %v6310_v18 = vld [vmem:[#allocation17_spill] sm:$0xff]  ;;  %v6322_v12 = vld [vmem:[#allocation16_spill] sm:$0xff]  ;;  %v6331_v5 = vld [vmem:[#allocation26_spill] sm:$0xff] }
 0x1d3   : > { %v3085_v51 = vmax.f32 %v3053_v31, 0.0  ;;  %v4187_v32 = vpop.f32.mrf.mxu1  ;;  %v2176_v30 = vadd.f32 %v6310_v18, %v6309_v36  ;;  %v6323_v13 = vld [vmem:[#allocation8_spill] sm:$0xff]  ;;  %v6324_v36 = vld [vmem:[#allocation21_spill] sm:$0xff] }
 0x1d4   : > { %v3088_v40 = vmax.f32 %v3056_v16, 0.0  ;;  %v3055_v27 = vadd.f32 %v5825_v7, %v3016_v8  ;;  %v3019_v33 = vmul.f32 %v5815_v59, %v2980_v61  ;;  %v2979_v20 = vadd.f32 %v2868_v41, %v2708_v46  ;;  %v2878_v10 = vpop.f32.mrf.mxu0  ;;  %v6311_v16 = vld [vmem:[#allocation7_spill] sm:$0xff]  ;;  %v6325_v18 = vld [vmem:[#allocation33_spill] sm:$0xff]  ;;  %v6332_v23 = vld [vmem:[#allocation12_spill] sm:$0xff] }
 0x1d5   : > { %3118 = vst.msk [vmem:[%s5841_s21 + $0x40] sm:$0xff] %vm3109_vm4, %v3085_v51  ;;  %v2711_v58 = vadd.f32 %v4187_v32, %v2439_v49  ;;  %v2607_v42 = vpop.f32.mrf.mxu1  ;;  %v2442_v8 = vadd.f32 %v6311_v16, %v2174_v21  ;;  %v6312_v61 = vld [vmem:[#allocation11_spill] sm:$0xff]  ;;  %v6314_v49 = vld [vmem:[#allocation22_spill] sm:$0xff]  ;;  %v2181_v21 = vadd.f32 %v6321_v14, %v6320_v45  ;;  %v6326_v16 = vld [vmem:[#allocation29_spill] sm:$0xff] }
 0x1d6   : > { %3121 = vst.msk [vmem:[%s5841_s21 + $0x58] sm:$0xff] %vm3109_vm4, %v3088_v40  ;;  %v3087_v11 = vmax.f32 %v3055_v27, 0.0  ;;  %v3058_v35 = vadd.f32 %v5825_v7, %v3019_v33  ;;  %v3018_v55 = vmul.f32 %v5815_v59, %v2979_v20  ;;  %v2710_v24 = vadd.f32 %v2607_v42, %v2438_v53  ;;  %v4240_v4 = vpop.f32.mrf.mxu0  ;;  %v6335_v45 = vld [vmem:[#allocation28_spill] sm:$0xff] }
 0x1d7   : > { %v2982_v60 = vadd.f32 %v4237_v63, %v2711_v58  ;;  %v4190_v54 = vpop.f32.mrf.mxu1  ;;  %v2445_v46 = vadd.f32 %v6312_v61, %v2177_v52  ;;  %v6313_v63 = vld [vmem:[#allocation42_spill] sm:$0xff]  ;;  %v2180_v52 = vadd.f32 %v6323_v13, %v6322_v12  ;;  %v6327_v61 = vld [vmem:[#allocation31_spill] sm:$0xff]  ;;  %v6336_v14 = vld [vmem:[#allocation4_spill] sm:$0xff] }
 0x1d8   : > { %3120 = vst.msk [vmem:[%s5841_s21 + $0x50] sm:$0xff] %vm3109_vm4, %v3087_v11  ;;  %v3090_v57 = vmax.f32 %v3058_v35, 0.0  ;;  %v3057_v47 = vadd.f32 %v5825_v7, %v3018_v55  ;;  %v2981_v9 = vadd.f32 %v2878_v10, %v2710_v24  ;;  %v2713_v44 = vadd.f32 %v4190_v54, %v2441_v29  ;;  %v2888_v50 = vpop.f32.mrf.mxu0  ;;  %v6315_v10 = vld [vmem:[#allocation15_spill] sm:$0xff]  ;;  %v6337_v12 = vld [vmem:[#allocation30_spill] sm:$0xff] }
 0x1d9   : > { %v3021_v22 = vmul.f32 %v5815_v59, %v2982_v60  ;;  %v2617_v38 = vpop.f32.mrf.mxu1  ;;  %v2179_v53 = vadd.f32 %v6314_v49, %v6313_v63  ;;  %v2444_v29 = vadd.f32 %v6315_v10, %v2176_v30  ;;  %v2183_v30 = vadd.f32 %v6325_v18, %v6324_v36  ;;  %v6328_v63 = vld [vmem:[#allocation24_spill] sm:$0xff]  ;;  %v6329_v49 = vld [vmem:[#allocation10_spill] sm:$0xff] }
 0x1da   : > { %3123 = vst.msk [vmem:[%s5841_s21 + $0x68] sm:$0xff] %vm3109_vm4, %v3090_v57  ;;  %v3089_v48 = vmax.f32 %v3057_v47, 0.0  ;;  %v3020_v26 = vmul.f32 %v5815_v59, %v2981_v9  ;;  %v2984_v28 = vadd.f32 %v4240_v4, %v2713_v44  ;;  %v2712_v56 = vadd.f32 %v2617_v38, %v2440_v1  ;;  %v4243_v39 = vpop.f32.mrf.mxu0  ;;  %v6330_v10 = vld [vmem:[#allocation18_spill] sm:$0xff] }
 0x1db   : > { %v3060_v34 = vadd.f32 %v5825_v7, %v3021_v22  ;;  %v4193_v43 = vpop.f32.mrf.mxu1  ;;  %v2447_v1 = vadd.f32 %v6318_v0, %v2179_v53  ;;  %v2182_v53 = vadd.f32 %v6329_v49, %v6328_v63  ;;  %v6333_v0 = vld [vmem:[#allocation14_spill] sm:$0xff]  ;;  %v2187_v13 = vadd.f32 %v5800_v19, %v6337_v12 }
 0x1dc   : > { %3122 = vst.msk [vmem:[%s5841_s21 + $0x60] sm:$0xff] %vm3109_vm4, %v3089_v48  ;;  %v3059_v62 = vadd.f32 %v5825_v7, %v3020_v26  ;;  %v3023_v41 = vmul.f32 %v5815_v59, %v2984_v28  ;;  %v2983_v3 = vadd.f32 %v2888_v50, %v2712_v56  ;;  %v2715_v31 = vadd.f32 %v4193_v43, %v2443_v15  ;;  %v2898_v6 = vpop.f32.mrf.mxu0 }
 0x1dd   : > { %v3092_v25 = vmax.f32 %v3060_v34, 0.0  ;;  %v2627_v51 = vpop.f32.mrf.mxu1  ;;  %v2446_v15 = vadd.f32 %v6319_v17, %v2178_v37  ;;  %v2185_v37 = vadd.f32 %v6332_v23, %v6331_v5  ;;  %v6334_v17 = vld [vmem:[#allocation23_spill] sm:$0xff] }
 0x1de   : > { %v3091_v32 = vmax.f32 %v3059_v62, 0.0  ;;  %v3062_v40 = vadd.f32 %v5825_v7, %v3023_v41  ;;  %v3022_v27 = vmul.f32 %v5815_v59, %v2983_v3  ;;  %v2986_v33 = vadd.f32 %v4243_v39, %v2715_v31  ;;  %v4246_v20 = vpop.f32.mrf.mxu0 }
 0x1df   : > { %3125 = vst.msk [vmem:[%s5841_s21 + $0x78] sm:$0xff] %vm3109_vm4, %v3092_v25  ;;  %v2714_v58 = vadd.f32 %v2627_v51, %v2442_v8  ;;  %v4196_v42 = vpop.f32.mrf.mxu1  ;;  %v2449_v8 = vadd.f32 %v6326_v16, %v2181_v21  ;;  %v2184_v21 = vadd.f32 %v6336_v14, %v6335_v45 }
 0x1e0   : > { %3124 = vst.msk [vmem:[%s5841_s21 + $0x70] sm:$0xff] %vm3109_vm4, %v3091_v32  ;;  %v3094_v11 = vmax.f32 %v3062_v40, 0.0  ;;  %v3061_v35 = vadd.f32 %v5825_v7, %v3022_v27  ;;  %v3025_v55 = vmul.f32 %v5815_v59, %v2986_v33  ;;  %v2717_v24 = vadd.f32 %v4196_v42, %v2445_v46  ;;  %v2908_v4 = vpop.f32.mrf.mxu0 }
 0x1e1   : > { %v2985_v60 = vadd.f32 %v2898_v6, %v2714_v58  ;;  %v2637_v54 = vpop.f32.mrf.mxu1  ;;  %v2448_v46 = vadd.f32 %v6327_v61, %v2180_v52 }
 0x1e2   : > { %3127 = vst.msk [vmem:[%s5841_s21 + $0x88] sm:$0xff] %vm3109_vm4, %v3094_v11  ;;  %v3093_v57 = vmax.f32 %v3061_v35, 0.0  ;;  %v3064_v47 = vadd.f32 %v5825_v7, %v3025_v55  ;;  %v2988_v9 = vadd.f32 %v4246_v20, %v2717_v24  ;;  %v2716_v44 = vadd.f32 %v2637_v54, %v2444_v29  ;;  %v4249_v50 = vpop.f32.mrf.mxu0 }
 0x1e3   : > { %v3024_v22 = vmul.f32 %v5815_v59, %v2985_v60  ;;  %v4199_v38 = vpop.f32.mrf.mxu1  ;;  %v2451_v29 = vadd.f32 %v6330_v10, %v2183_v30 }
 0x1e4   : > { %3126 = vst.msk [vmem:[%s5841_s21 + $0x80] sm:$0xff] %vm3109_vm4, %v3093_v57  ;;  %v3096_v48 = vmax.f32 %v3064_v47, 0.0  ;;  %v3027_v26 = vmul.f32 %v5815_v59, %v2988_v9  ;;  %v2987_v28 = vadd.f32 %v2908_v4, %v2716_v44  ;;  %v2719_v56 = vadd.f32 %v4199_v38, %v2447_v1  ;;  %v2918_v39 = vpop.f32.mrf.mxu0 }
 0x1e5   : > { %v3063_v34 = vadd.f32 %v5825_v7, %v3024_v22  ;;  %v2647_v43 = vpop.f32.mrf.mxu1  ;;  %v2450_v1 = vadd.f32 %v6333_v0, %v2182_v53  ;;  %v6341_v53 = vld [vmem:[#allocation35_spill] sm:$0xff] }
 0x1e6   : > { %3129 = vst.msk [vmem:[%s5841_s21 + $0x98] sm:$0xff] %vm3109_vm4, %v3096_v48  ;;  %v3066_v62 = vadd.f32 %v5825_v7, %v3027_v26  ;;  %v3026_v41 = vmul.f32 %v5815_v59, %v2987_v28  ;;  %v2990_v3 = vadd.f32 %v4249_v50, %v2719_v56  ;;  %v2718_v31 = vadd.f32 %v2647_v43, %v2446_v15  ;;  %v4252_v6 = vpop.f32.mrf.mxu0 }
 0x1e7   : > { %v3095_v25 = vmax.f32 %v3063_v34, 0.0  ;;  %v4202_v51 = vpop.f32.mrf.mxu1  ;;  %v2453_v15 = vadd.f32 %v6334_v17, %v2185_v37 }
 0x1e8   : > { %v3098_v32 = vmax.f32 %v3066_v62, 0.0  ;;  %v3065_v40 = vadd.f32 %v5825_v7, %v3026_v41  ;;  %v3029_v27 = vmul.f32 %v5815_v59, %v2990_v3  ;;  %v2989_v33 = vadd.f32 %v2918_v39, %v2718_v31  ;;  %v2928_v20 = vpop.f32.mrf.mxu0  ;;  %v6338_v39 = vld [vmem:[#allocation32_spill] sm:$0xff]  ;;  %v6339_v3 = vld [vmem:[#allocation34_spill] sm:$0xff] }
 0x1e9   : > { %3128 = vst.msk [vmem:[%s5841_s21 + $0x90] sm:$0xff] %vm3109_vm4, %v3095_v25  ;;  %v2721_v58 = vadd.f32 %v4202_v51, %v2449_v8  ;;  %v2657_v42 = vpop.f32.mrf.mxu1  ;;  %v2186_v36 = vadd.f32 %v5805_v2, %v6338_v39  ;;  %v2452_v31 = vadd.f32 %v6339_v3, %v2184_v21 }
 0x1ea   : > { %3131 = vst.msk [vmem:[%s5841_s21 + $0xa8] sm:$0xff] %vm3109_vm4, %v3098_v32  ;;  %v3097_v11 = vmax.f32 %v3065_v40, 0.0  ;;  %v3068_v35 = vadd.f32 %v5825_v7, %v3029_v27  ;;  %v3028_v55 = vmul.f32 %v5815_v59, %v2989_v33  ;;  %v2720_v24 = vadd.f32 %v2657_v42, %v2448_v46  ;;  %v4255_v4 = vpop.f32.mrf.mxu0 }
 0x1eb   : > { %v2992_v60 = vadd.f32 %v4252_v6, %v2721_v58  ;;  %v4205_v54 = vpop.f32.mrf.mxu1  ;;  %v6340_v6 = vld [vmem:[#allocation19_spill] sm:$0xff]  ;;  %v2454_v25 = vadd.f32 %v6341_v53, %v2186_v36 }
 0x1ec   : > { %3130 = vst.msk [vmem:[%s5841_s21 + $0xa0] sm:$0xff] %vm3109_vm4, %v3097_v11  ;;  %v3100_v57 = vmax.f32 %v3068_v35, 0.0  ;;  %v3067_v47 = vadd.f32 %v5825_v7, %v3028_v55  ;;  %v2991_v9 = vadd.f32 %v2928_v20, %v2720_v24  ;;  %v2723_v44 = vadd.f32 %v4205_v54, %v2451_v29  ;;  %v2938_v50 = vpop.f32.mrf.mxu0 }
 0x1ed   : > { %v3031_v52 = vmul.f32 %v5815_v59, %v2992_v60  ;;  %v2667_v22 = vpop.f32.mrf.mxu1  ;;  %v2455_v16 = vadd.f32 %v6340_v6, %v2187_v13 }
 0x1ee   : > { %3133 = vst.msk [vmem:[%s5841_s21 + $0xb8] sm:$0xff] %vm3109_vm4, %v3100_v57  ;;  %v3099_v38 = vmax.f32 %v3067_v47, 0.0  ;;  %v3030_v48 = vmul.f32 %v5815_v59, %v2991_v9  ;;  %v2994_v26 = vadd.f32 %v4255_v4, %v2723_v44  ;;  %v2722_v28 = vadd.f32 %v2667_v22, %v2450_v1  ;;  %v4258_v56 = vpop.f32.mrf.mxu0 }
 0x1ef   : > { %v3070_v18 = vadd.f32 %v5825_v7, %v3031_v52  ;;  %v4208_v30 = vpop.f32.mrf.mxu1 }
 0x1f0   : > { %3132 = vst.msk [vmem:[%s5841_s21 + $0xb0] sm:$0xff] %vm3109_vm4, %v3099_v38  ;;  %v3069_v19 = vadd.f32 %v5825_v7, %v3030_v48  ;;  %v3033_v34 = vmul.f32 %v5815_v59, %v2994_v26  ;;  %v2993_v43 = vadd.f32 %v2938_v50, %v2722_v28  ;;  %v2725_v62 = vadd.f32 %v4208_v30, %v2453_v15  ;;  %v2948_v41 = vpop.f32.mrf.mxu0 }
 0x1f1   : > { %v3102_v8 = vmax.f32 %v3070_v18, 0.0  ;;  %v2677_v2 = vpop.f32.mrf.mxu1 }
 0x1f2   : > { %v3101_v61 = vmax.f32 %v3069_v19, 0.0  ;;  %v3072_v46 = vadd.f32 %v5825_v7, %v3033_v34  ;;  %v3032_v63 = vmul.f32 %v5815_v59, %v2993_v43  ;;  %v2996_v49 = vadd.f32 %v4258_v56, %v2725_v62  ;;  %v4261_v40 = vpop.f32.mrf.mxu0 }
 0x1f3   : > { %3135 = vst.msk [vmem:[%s5841_s21 + $0xc8] sm:$0xff] %vm3109_vm4, %v3102_v8  ;;  %v2724_v51 = vadd.f32 %v2677_v2, %v2452_v31  ;;  %v4211_v32 = vpop.f32.mrf.mxu1 }
 0x1f4   : > { %3134 = vst.msk [vmem:[%s5841_s21 + $0xc0] sm:$0xff] %vm3109_vm4, %v3101_v61  ;;  %v3104_v27 = vmax.f32 %v3072_v46, 0.0  ;;  %v3071_v33 = vadd.f32 %v5825_v7, %v3032_v63  ;;  %v3035_v20 = vmul.f32 %v5815_v59, %v2996_v49  ;;  %v2727_v10 = vadd.f32 %v4211_v32, %v2455_v16  ;;  %v2958_v35 = vpop.f32.mrf.mxu0 }
 0x1f5   : > { %v2995_v29 = vadd.f32 %v2948_v41, %v2724_v51  ;;  %v2687_v5 = vpop.f32.mrf.mxu1 }
 0x1f6   : > { %3137 = vst.msk [vmem:[%s5841_s21 + $0xd8] sm:$0xff] %vm3109_vm4, %v3104_v27  ;;  %v3103_v23 = vmax.f32 %v3071_v33, 0.0  ;;  %v3074_v37 = vadd.f32 %v5825_v7, %v3035_v20  ;;  %v2998_v58 = vadd.f32 %v4261_v40, %v2727_v10  ;;  %v2726_v42 = vadd.f32 %v2687_v5, %v2454_v25 }
 0x1f7   : > { %v3034_v11 = vmul.f32 %v5815_v59, %v2995_v29 }
 0x1f8   : > { %3136 = vst.msk [vmem:[%s5841_s21 + $0xd0] sm:$0xff] %vm3109_vm4, %v3103_v23  ;;  %v3106_v55 = vmax.f32 %v3074_v37, 0.0  ;;  %v3037_v24 = vmul.f32 %v5815_v59, %v2998_v58  ;;  %v2997_v4 = vadd.f32 %v2958_v35, %v2726_v42 }
 0x1f9   : > { %v3073_v0 = vadd.f32 %v5825_v7, %v3034_v11 }
 0x1fa   : > { %3139 = vst.msk [vmem:[%s5841_s21 + $0xe8] sm:$0xff] %vm3109_vm4, %v3106_v55  ;;  %v3076_v1 = vadd.f32 %v5825_v7, %v3037_v24  ;;  %v3036_v60 = vmul.f32 %v5815_v59, %v2997_v4 }
 0x1fb   : > { %v3105_v54 = vmax.f32 %v3073_v0, 0.0 }
 0x1fc   : > { %v3108_v57 = vmax.f32 %v3076_v1, 0.0  ;;  %v3075_v47 = vadd.f32 %v5825_v7, %v3036_v60 }
 0x1fd   : > { %3138 = vst.msk [vmem:[%s5841_s21 + $0xe0] sm:$0xff] %vm3109_vm4, %v3105_v54 }
 0x1fe   : > { %3141 = vst.msk [vmem:[%s5841_s21 + $0xf8] sm:$0xff] %vm3109_vm4, %v3108_v57  ;;  %v3107_v9 = vmax.f32 %v3075_v47, 0.0 }
 0x200   : > { %3140 = vst.msk [vmem:[%s5841_s21 + $0xf0] sm:$0xff] %vm3109_vm4, %v3107_v9 }
 0x201 PF: > { %s14_s15 = sadd.s32 1, %s4279_s15  }
 0x202   : > { %p11_p4 = scmp.ge.s32.totalorder %s14_s15, 4  }
 0x204   :  { %13 = sbr.rel (!%p11_p4) target bundleno = 1 (0x1), region = 74 }

</bundles_post_ra>
